<compile_context>
chip_gen: v6e
topology: v6e:2x2x1
jax: 0.10.0
libtpu: 0.0.40
codegen_flags: <defaults>
</compile_context>

<pallas_src>
import functools

import jax
import jax.numpy as jnp
from jax.experimental import pallas as pl
from jax.experimental.pallas import tpu as pltpu

NUM_ANCHORS = 9
HIDDEN = 512            # conv output channels, fixed by the module definition
NPAD = 128              # fused [cls | reg] head width padded to one lane-dense vreg
_TM_MAX = 1024          # largest row strip considered (few-MiB per-tile footprint)
_BIG_WEIGHT_BYTES = 1 << 20   # single-buffer weights only when they are big


def _round_up(x, m):
    return (x + m - 1) // m * m


def _rpn_kernel(patch_ref, wconv_ref, bconv_ref, whead_ref, bhead_ref, out_ref):
    # patch_ref : (TM, K)        bf16 im2col rows (K = 9*Cin, NOT padded in HBM)
    # wconv_ref : (K, HIDDEN)    bf16 3x3 conv weight as a GEMM matrix
    # bconv_ref : (1, HIDDEN)    f32
    # whead_ref : (HIDDEN, NPAD) bf16 fused [cls | reg] 1x1 weights, N zero-padded
    # bhead_ref : (1, NPAD)      f32
    # out_ref   : (TM, NPAD)     bf16 fused [cls | reg] output (lane-dense)
    acc = jnp.dot(patch_ref[...], wconv_ref[...],
                  preferred_element_type=jnp.float32)          # (TM, HIDDEN)
    feat = jnp.maximum(acc + bconv_ref[...], 0.0)              # bias + ReLU (f32, VPU)
    out = jnp.dot(feat.astype(jnp.bfloat16), whead_ref[...],
                  preferred_element_type=jnp.float32) + bhead_ref[...]
    out_ref[...] = out.astype(out_ref.dtype)


def _im2col(x_nhwc):
    """(B,H,W,Cin) -> (B*H*W, 9*Cin) patch matrix, tap order (ky, kx, cin)."""
    B, H, W, Cin = x_nhwc.shape
    xp = jnp.pad(x_nhwc, ((0, 0), (1, 1), (1, 1), (0, 0)))
    taps = [xp[:, ky:ky + H, kx:kx + W, :] for ky in range(3) for kx in range(3)]
    patches = jnp.stack(taps, axis=3)            # (B, H, W, 9, Cin)
    return patches.reshape(B * H * W, 9 * Cin)


def _pick_tile(rows):
    """Largest power-of-two row strip <= _TM_MAX that still yields >= 2 programs
    over the WHOLE (batch-folded) grid; rows are padded up to a multiple of it."""
    for tm in (1024, 512, 256, 128, 64, 32, 16):
        if tm <= _TM_MAX and pl.cdiv(rows, tm) >= 2:
            return tm
    return 16


@functools.partial(jax.jit, static_argnames=("num_anchors",))
def rpn_forward(x_nhwc, w_conv, b_conv, w_cls, b_cls, w_reg, b_reg,
                num_anchors=NUM_ANCHORS):
    """x_nhwc: (B, H, W, Cin) float32.  Returns (cls, reg) as in the PyTorch RPN."""
    B, H, W, Cin = x_nhwc.shape
    HW = H * W
    ROWS = B * HW
    K = 9 * Cin
    NOUT = 5 * num_anchors                 # cls (A) + reg (4A) fused
    assert NOUT <= NPAD

    TM = _pick_tile(ROWS)
    ROWS_PAD = _round_up(ROWS, TM)

    # TODO(synk): for backbone-sized Cin (9*Cin >= ~1152) move im2col into the
    # kernel (9 accumulating (TM,Cin)x(Cin,512) matmuls over a haloed row block)
    # to avoid streaming the 9x-expanded patch tensor through HBM.
    patches = _im2col(x_nhwc.astype(jnp.bfloat16))         # (ROWS, K) bf16
    if ROWS_PAD != ROWS:
        patches = jnp.pad(patches, ((0, ROWS_PAD - ROWS), (0, 0)))

    w_conv_k = w_conv.reshape(K, HIDDEN).astype(jnp.bfloat16)
    b_conv_f = b_conv.reshape(1, HIDDEN).astype(jnp.float32)
    w_head = jnp.pad(jnp.concatenate([w_cls, w_reg], axis=1).astype(jnp.bfloat16),
                     ((0, 0), (0, NPAD - NOUT)))
    b_head = jnp.pad(jnp.concatenate([b_cls.reshape(1, -1),
                                      b_reg.reshape(1, -1)],
                                     axis=1).astype(jnp.float32),
                     ((0, 0), (0, NPAD - NOUT)))

    # Single-buffer the constant-index weight blocks only when the saving is
    # material (large Cin); at small K the default double-buffer is harmless.
    big_weights = K * HIDDEN * 2 >= _BIG_WEIGHT_BYTES

    def _const_spec(shape):
        if big_weights:
            return pl.BlockSpec(shape, lambda m: (0,) * len(shape),
                                pipeline_mode=pl.Buffered(1))
        return pl.BlockSpec(shape, lambda m: (0,) * len(shape))

    # Scoped-VMEM budget: double-buffered patch/out strips, weights, biases and
    # the f32 (TM, HIDDEN) intermediate, with 2x headroom; floor at the 32 MiB
    # v6e/v7x default so v5e's 16 MiB scoped default never under-provisions.
    vmem_est = (2 * TM * K * 2                                  # patch blocks (bf16)
                + 2 * TM * NPAD * 2                             # out blocks (bf16)
                + (K * HIDDEN + HIDDEN * NPAD) * 2 * (1 if big_weights else 2)
                + (HIDDEN + NPAD) * 4 * 2                       # biases (f32)
                + TM * HIDDEN * 4)                              # feat intermediate
    vmem_limit = int(min(96 * 2**20, max(32 * 2**20, 2 * vmem_est)))

    out = pl.pallas_call(
        _rpn_kernel,
        out_shape=jax.ShapeDtypeStruct((ROWS_PAD, NPAD), jnp.bfloat16),
        grid_spec=pltpu.PrefetchScalarGridSpec(
            num_scalar_prefetch=0,
            grid=(ROWS_PAD // TM,),
            in_specs=[
                pl.BlockSpec((TM, K), lambda m: (m, 0)),        # full-extent K dim
                _const_spec((K, HIDDEN)),
                _const_spec((1, HIDDEN)),
                _const_spec((HIDDEN, NPAD)),
                _const_spec((1, NPAD)),
            ],
            out_specs=pl.BlockSpec((TM, NPAD), lambda m: (m, 0)),
        ),
        compiler_params=pltpu.CompilerParams(
            dimension_semantics=("parallel",),
            vmem_limit_bytes=vmem_limit),
    )(patches, w_conv_k, b_conv_f, w_head, b_head)

    out = out[:ROWS].reshape(B, HW, NPAD)
    cls = out[..., :num_anchors].astype(jnp.float32)
    reg = out[..., num_anchors:NOUT].astype(jnp.float32)
    return cls, reg


def _reference(x_nhwc, w_conv, b_conv, w_cls, b_cls, w_reg, b_reg):
    """Pure-JAX f32 reference matching the PyTorch module semantics (NHWC)."""
    B, H, W, Cin = x_nhwc.shape
    dn = jax.lax.conv_dimension_numbers(x_nhwc.shape, w_conv.shape,
                                        ("NHWC", "HWIO", "NHWC"))
    feat = jax.lax.conv_general_dilated(
        x_nhwc, w_conv, window_strides=(1, 1), padding="SAME",
        dimension_numbers=dn) + b_conv
    feat = jnp.maximum(feat, 0.0)
    cls = jnp.einsum("bhwc,co->bhwo", feat, w_cls) + b_cls
    reg = jnp.einsum("bhwc,co->bhwo", feat, w_reg) + b_reg
    return (cls.reshape(B, H * W, NUM_ANCHORS),
            reg.reshape(B, H * W, 4 * NUM_ANCHORS))


if __name__ == "__main__":
    B, Cin, H, W = 2, 4, 16, 16   # PyTorch input would be NCHW (2, 4, 16, 16)
    key = jax.random.PRNGKey(0)
    kx, k1, k2, k3, k4, k5, k6 = jax.random.split(key, 7)

    # Input generated in NHWC directly (== NCHW x.permute(0, 2, 3, 1)).
    x = jax.random.normal(kx, (B, H, W, Cin), jnp.float32)

    # Deterministic parameter init (shapes from the module __init__);
    # 3x3 conv weight in HWIO layout (PyTorch's is (512, Cin, 3, 3)).
    w_conv = jax.random.normal(k1, (3, 3, Cin, HIDDEN), jnp.float32) * 0.05
    b_conv = jax.random.normal(k2, (HIDDEN,), jnp.float32) * 0.05
    w_cls = jax.random.normal(k3, (HIDDEN, NUM_ANCHORS), jnp.float32) * 0.05
    b_cls = jax.random.normal(k4, (NUM_ANCHORS,), jnp.float32) * 0.05
    w_reg = jax.random.normal(k5, (HIDDEN, 4 * NUM_ANCHORS), jnp.float32) * 0.05
    b_reg = jax.random.normal(k6, (4 * NUM_ANCHORS,), jnp.float32) * 0.05

    cls_scores, reg_offsets = rpn_forward(x, w_conv, b_conv, w_cls, b_cls,
                                          w_reg, b_reg)
    jax.block_until_ready((cls_scores, reg_offsets))

    cls_ref, reg_ref = _reference(x, w_conv, b_conv, w_cls, b_cls, w_reg, b_reg)
    assert cls_scores.shape == (B, H * W, NUM_ANCHORS)
    assert reg_offsets.shape == (B, H * W, 4 * NUM_ANCHORS)
    # bf16 MXU operands + bf16 output store (f32 accumulate) -> looser tolerance.
    assert jnp.allclose(cls_scores, cls_ref, atol=5e-2, rtol=5e-2)
    assert jnp.allclose(reg_offsets, reg_ref, atol=5e-2, rtol=5e-2)

    print("KERNEL_OK")
</pallas_src>

<mosaic_0001>
module attributes {stable_mosaic.version = 11 : i64} {
  func.func @_rpn_kernel(%arg0: i32, %arg1: memref<256x36xbf16, #tpu.memory_space<vmem>>, %arg2: memref<36x512xbf16, #tpu.memory_space<vmem>>, %arg3: memref<1x512xf32, #tpu.memory_space<vmem>>, %arg4: memref<512x128xbf16, #tpu.memory_space<vmem>>, %arg5: memref<1x128xf32, #tpu.memory_space<vmem>>, %arg6: memref<256x128xbf16, #tpu.memory_space<vmem>>) attributes {dimension_semantics = [#tpu.dimension_semantics<parallel>], iteration_bounds = array<i64: 2>, scalar_prefetch = 0 : i64, scratch_operands = 0 : i64, tpu.core_type = #tpu.core_type<tc>, window_params = [{transform_indices = @transform_0, window_bounds = array<i64: 256, 36>}, {pipeline_mode = #tpu.pipeline_mode<synchronous>, transform_indices = @transform_1, window_bounds = array<i64: 36, 512>}, {pipeline_mode = #tpu.pipeline_mode<synchronous>, transform_indices = @transform_2, window_bounds = array<i64: 1, 512>}, {pipeline_mode = #tpu.pipeline_mode<synchronous>, transform_indices = @transform_3, window_bounds = array<i64: 512, 128>}, {pipeline_mode = #tpu.pipeline_mode<synchronous>, transform_indices = @transform_4, window_bounds = array<i64: 1, 128>}, {transform_indices = @transform_5, window_bounds = array<i64: 256, 128>}]} {
    %c0 = arith.constant 0 : index
    %c0_0 = arith.constant 0 : index
    %0 = vector.load %arg1[%c0, %c0_0] : memref<256x36xbf16, #tpu.memory_space<vmem>>, vector<256x36xbf16>
    %c0_1 = arith.constant 0 : index
    %c0_2 = arith.constant 0 : index
    %1 = vector.load %arg2[%c0_1, %c0_2] : memref<36x512xbf16, #tpu.memory_space<vmem>>, vector<36x512xbf16>
    %cst = arith.constant dense<0.000000e+00> : vector<256x512xf32>
    %2 = tpu.matmul %0, %1, %cst {dimension_numbers = #tpu.dot_dimension_numbers<[1], [0], [0], [1], [0, 0, 1, 1], [], []>} : vector<256x36xbf16>, vector<36x512xbf16>, vector<256x512xf32> -> vector<256x512xf32>
    %c0_3 = arith.constant 0 : index
    %c0_4 = arith.constant 0 : index
    %3 = vector.load %arg3[%c0_3, %c0_4] : memref<1x512xf32, #tpu.memory_space<vmem>>, vector<1x512xf32>
    %4 = vector.broadcast %3 : vector<1x512xf32> to vector<256x512xf32>
    %5 = arith.addf %2, %4 : vector<256x512xf32>
    %cst_5 = arith.constant 0.000000e+00 : f32
    %6 = vector.broadcast %cst_5 : f32 to vector<256x512xf32>
    %7 = arith.maximumf %5, %6 : vector<256x512xf32>
    %8 = arith.truncf %7 : vector<256x512xf32> to vector<256x512xbf16>
    %c0_6 = arith.constant 0 : index
    %c0_7 = arith.constant 0 : index
    %9 = vector.load %arg4[%c0_6, %c0_7] : memref<512x128xbf16, #tpu.memory_space<vmem>>, vector<512x128xbf16>
    %cst_8 = arith.constant dense<0.000000e+00> : vector<256x128xf32>
    %10 = tpu.matmul %8, %9, %cst_8 {dimension_numbers = #tpu.dot_dimension_numbers<[1], [0], [0], [1], [0, 0, 1, 1], [], []>} : vector<256x512xbf16>, vector<512x128xbf16>, vector<256x128xf32> -> vector<256x128xf32>
    %c0_9 = arith.constant 0 : index
    %c0_10 = arith.constant 0 : index
    %11 = vector.load %arg5[%c0_9, %c0_10] : memref<1x128xf32, #tpu.memory_space<vmem>>, vector<1x128xf32>
    %12 = vector.broadcast %11 : vector<1x128xf32> to vector<256x128xf32>
    %13 = arith.addf %10, %12 : vector<256x128xf32>
    %14 = arith.truncf %13 : vector<256x128xf32> to vector<256x128xbf16>
    %c0_11 = arith.constant 0 : index
    %c0_12 = arith.constant 0 : index
    %15 = vector.load %arg6[%c0_11, %c0_12] : memref<256x128xbf16, #tpu.memory_space<vmem>>, vector<256x128xbf16>
    tpu.vector_store %arg6[%c0_11, %c0_12], %14 {strides = array<i32>} : memref<256x128xbf16, #tpu.memory_space<vmem>>, vector<256x128xbf16>,
    return
  }
  func.func @transform_0(%arg0: i32) -> (i32, i32) {
    %c0_i32 = arith.constant 0 : i32
    %c0_i32_0 = arith.constant 0 : i32
    return %arg0, %c0_i32 : i32, i32
  }
  func.func @transform_1(%arg0: i32) -> (i32, i32) {
    %c0_i32 = arith.constant 0 : i32
    %c0_i32_0 = arith.constant 0 : i32
    %c0_i32_1 = arith.constant 0 : i32
    return %c0_i32, %c0_i32_0 : i32, i32
  }
  func.func @transform_2(%arg0: i32) -> (i32, i32) {
    %c0_i32 = arith.constant 0 : i32
    %c0_i32_0 = arith.constant 0 : i32
    %c0_i32_1 = arith.constant 0 : i32
    return %c0_i32, %c0_i32_0 : i32, i32
  }
  func.func @transform_3(%arg0: i32) -> (i32, i32) {
    %c0_i32 = arith.constant 0 : i32
    %c0_i32_0 = arith.constant 0 : i32
    %c0_i32_1 = arith.constant 0 : i32
    return %c0_i32, %c0_i32_0 : i32, i32
  }
  func.func @transform_4(%arg0: i32) -> (i32, i32) {
    %c0_i32 = arith.constant 0 : i32
    %c0_i32_0 = arith.constant 0 : i32
    %c0_i32_1 = arith.constant 0 : i32
    return %c0_i32, %c0_i32_0 : i32, i32
  }
  func.func @transform_5(%arg0: i32) -> (i32, i32) {
    %c0_i32 = arith.constant 0 : i32
    %c0_i32_0 = arith.constant 0 : i32
    return %arg0, %c0_i32 : i32, i32
  }
}

</mosaic_0001>

<bundles_post_ra>
// kernel: rpn_forward.1
= control target key start
LH: loop header
LB: loop body
LE: loop exit
PB: predicated region body
PF: predicated region fallthrough
CT: control target
= control target key end

     0   :  { %s2465_s18 = smov 0   ;;  %s2891_s0 = inlined_call_operand.vmem [shape: bf16[512,36], index: 0, kind: input, shape index: {}]   ;;  %s2892_s1 = inlined_call_operand.vmem [shape: bf16[36,512], index: 1, kind: input, shape index: {}]   ;;  %s2893_s2 = inlined_call_operand.vmem [shape: f32[1,512], index: 2, kind: input, shape index: {}]   ;;  %s2894_s3 = inlined_call_operand.vmem [shape: bf16[512,128], index: 3, kind: input, shape index: {}]   ;;  %s2895_s4 = inlined_call_operand.vmem [shape: f32[1,128], index: 4, kind: input, shape index: {}]   ;;  %s2896_s5 = inlined_call_operand.vmem [shape: bf16[512,128], index: 5, kind: output, shape index: {}]  }
   0x1 LB: > { %s1864_s19 = sadd.s32 4294967295, %s2432_s18   ;;  %p1868_p0 = scmp.ge.s32.totalorder %s2432_s18, 1  ;;  %s2432_s18 = sphi %s2465_s18, %s15_s18  }
   0x2   : > { %p188_p1 = scmp.lt.s32.totalorder %s2432_s18, 3 }
   0x4   : > { %p189_p2 = pnand %p1868_p0, %p188_p1 }
   0x5   : > { %s1869_s26 = sshll.u32 (!%p189_p2), %s1864_s19, 5 }
   0x6   : > { %192 = sbr.rel (%p189_p2) target bundleno = 560 (0x230), region = 40  ;;  %p217_p3 = scmp.lt.s32.totalorder (!%p189_p2), %s1869_s26, 63 }
   0xb   : > { %v269_v0 = vld [vmem:[%s2892_s1 + $0x40] sm:$0x33]  ;;  %vm472_vm0 = vcmask 1041408   ;;  %v270_v1 = vld [vmem:[%s2892_s1 + $0x48] sm:$0x33]  ;;  %v2434_v15 = vmov 0  }
   0xc   : > { %v1898_v2 = vcombine.high %v269_v0, %v269_v0  ;;  %v1900_v3 = vcombine.high %v270_v1, %v270_v1  ;;  %v1897_v4 = vcombine.low %v269_v0, %v269_v0  ;;  %v1899_v5 = vcombine.low %v270_v1, %v270_v1  ;;  %v2366_v6 = vld [vmem:[%s2892_s1 + $0x24] ss:$16 sps:$4 sm:$0xff]   ;;  %v2368_v7 = vld [vmem:[%s2892_s1 + $0x2c] ss:$16 sps:$4 sm:$0xff]   ;;  %v2370_v8 = vld [vmem:[%s2892_s1 + $0x20] ss:$16 sps:$4 sm:$0xff]   ;;  %517 = vmatprep.mubr.bf16.mxu0 %v2434_v15 }
   0xd   : > { %v2371_v11 = vld [vmem:[%s2892_s1 + $0x28] ss:$16 sps:$4 sm:$0xff]   ;;  %v2372_v12 = vld [vmem:[%s2892_s1 + $0x4] ss:$16 sps:$4 sm:$0xff]   ;;  %v2374_v13 = vld [vmem:[%s2892_s1 + $0xc] ss:$16 sps:$4 sm:$0xff]   ;;  %710 = vmatprep.mubr.bf16.mxu1 %v2434_v15  ;;  %v273_v1 = vlaneseq }
   0xe   : > { %1901 = vmatprep.subr.msk.bf16.mxu0 %vm472_vm0, %v1898_v2  ;;  %1918 = vmatprep.subr.msk.bf16.mxu1 %vm472_vm0, %v1900_v3  ;;  %v474_v9 = vsel %vm472_vm0, %v1897_v4, 0  ;;  %v480_v10 = vsel %vm472_vm0, %v1899_v5, 0  ;;  %v2376_v14 = vld [vmem:[%s2892_s1] ss:$16 sps:$4 sm:$0xff]   ;;  %s2898_s26 = smov (!%p217_p3, %s1869_s26), 63  ;;  %v2388_v17 = vld [vmem:[%s2894_s3 + $0x78] sm:$0xff]  }
   0xf   : > { %496 = vmatpush1.bf16.msra.mxu0 %v474_v9  ;;  %689 = vmatpush1.bf16.msra.mxu1 %v480_v10  ;;  %v2377_v16 = vld [vmem:[%s2892_s1 + $0x8] ss:$16 sps:$4 sm:$0xff]   ;;  %s1870_s16 = sshll.u32 %s2898_s26, 2  ;;  %vm423_vm1 = vcmask 293888   ;;  %v2394_v23 = vld [vmem:[%s2894_s3 + $0x70] sm:$0xff]   ;;  %v2406_v33 = vld [vmem:[%s2894_s3 + $0x60] sm:$0xff]  }
  0x10   : > { %497 = vmatprep.subr.bf16.mxu0 %v2366_v6  ;;  %690 = vmatprep.subr.bf16.mxu1 %v2368_v7  ;;  %s2516_s22 = scalar_lea.vmem %s2891_s0, %s1870_s16  ;;  %v2390_v18 = vld [vmem:[%s2894_s3 + $0xf8] sm:$0xff]   ;;  %v2395_v24 = vld [vmem:[%s2894_s3 + $0x30] sm:$0xff]   ;;  %v2400_v28 = vld [vmem:[%s2894_s3 + $0x68] sm:$0xff]   ;;  %v274_v2 = vshrl.u32 %v273_v1, 7  ;;  %s2840_s28 = scalar_lea.vmem %s2896_s5, %s1870_s16 }
  0x11   : > { %v2378_v19 = vld [vmem:[%s2516_s22] sm:$0xff]   ;;  %v2389_v20 = vld [vmem:[%s2894_s3 + $0x38] sm:$0xff]   ;;  %v2379_v22 = vld [vmem:[%s2516_s22 + $0x8] sm:$0xff]  }
  0x12   : > { %v2392_v21 = vld [vmem:[%s2894_s3 + $0xb8] sm:$0xff]   ;;  %v2396_v25 = vld [vmem:[%s2894_s3 + $0xf0] sm:$0xff]   ;;  %v2401_v29 = vld [vmem:[%s2894_s3 + $0x28] sm:$0xff]   ;;  %v279_v3 = vsub.s32 1, %v274_v2  ;;  %v287_v4 = vsub.s32 3, %v274_v2  ;;  %v275_v5 = vsub.s32 0, %v274_v2 }
  0x13   : > { %498 = vmatpush1.bf16.msra.mxu0 %v2370_v8  ;;  %691 = vmatpush1.bf16.msra.mxu1 %v2371_v11  ;;  %v2398_v26 = vld [vmem:[%s2894_s3 + $0xb0] sm:$0xff]   ;;  %v2402_v30 = vld [vmem:[%s2894_s3 + $0xe8] sm:$0xff]   ;;  %v2381_v32 = vld [vmem:[%s2516_s22 + $0x18] sm:$0xff]   ;;  %v283_v6 = vsub.s32 2, %v274_v2 }
  0x14   : > { %499 = vmatprep.subr.bf16.mxu0 %v2372_v12  ;;  %692 = vmatprep.subr.bf16.mxu1 %v2374_v13  ;;  %v2380_v27 = vld [vmem:[%s2516_s22 + $0x10] sm:$0xff]   ;;  %v2404_v31 = vld [vmem:[%s2894_s3 + $0xa8] sm:$0xff]   ;;  %v2407_v34 = vld [vmem:[%s2894_s3 + $0x20] sm:$0xff]  }
  0x15   : > { %v2408_v35 = vld [vmem:[%s2894_s3 + $0xe0] sm:$0xff]   ;;  %v2410_v37 = vld [vmem:[%s2894_s3 + $0x58] sm:$0xff]   ;;  %v2414_v42 = vld [vmem:[%s2894_s3 + $0x50] sm:$0xff]  }
  0x16   : > { %v2409_v36 = vld [vmem:[%s2894_s3 + $0xa0] sm:$0xff]   ;;  %v2411_v38 = vld [vmem:[%s2894_s3 + $0x18] sm:$0xff]   ;;  %v2415_v43 = vld [vmem:[%s2894_s3 + $0x10] sm:$0xff]  }
  0x17   : > { %500 = vmatpush1.bf16.msra.mxu0 %v2376_v14  ;;  %693 = vmatpush1.bf16.msra.mxu1 %v2377_v16  ;;  %v2412_v39 = vld [vmem:[%s2894_s3 + $0xd8] sm:$0xff]   ;;  %v2382_v40 = vld [vmem:[%s2516_s22 + $0x20] sm:$0xff]   ;;  %v2416_v44 = vld [vmem:[%s2894_s3 + $0xd0] sm:$0xff]  }
  0x18   : > { %2129 = vmatprep.subr.bf16.mxu0 %v2388_v17  ;;  %2241 = vmatprep.subr.bf16.mxu1 %v2390_v18  ;;  %v2413_v41 = vld [vmem:[%s2894_s3 + $0x98] sm:$0xff]   ;;  %v2417_v45 = vld [vmem:[%s2894_s3 + $0x90] sm:$0xff]   ;;  %v2418_v46 = vld [vmem:[%s2894_s3 + $0x48] sm:$0xff]  }
  0x19   : > { %v2419_v47 = vld [vmem:[%s2894_s3 + $0x8] sm:$0xff]   ;;  %v2422_v51 = vld [vmem:[%s2894_s3 + $0x40] sm:$0xff]   ;;  %v2384_v54 = vld [vmem:[%s2516_s22 + $0x30] sm:$0xff]  }
  0x1a   : > { %1902 = vmatmul.mubr.msk.bf16.vlgmr.msra.gmra.mxu0 %vm423_vm1, %v2378_v19  ;;  %1919 = vmatmul.mubr.msk.bf16.vlgmr.msra.gmra.mxu1 %vm423_vm1, %v2378_v19  ;;  %v2420_v48 = vld [vmem:[%s2894_s3 + $0xc8] sm:$0xff]   ;;  %v2423_v52 = vld [vmem:[%s2894_s3] sm:$0xff]   ;;  %v2385_v55 = vld [vmem:[%s2516_s22 + $0x38] sm:$0xff]  }
  0x1b   : > { %527 = vmatprep.mubr.bf16.mxu0 %v2434_v15  ;;  %720 = vmatprep.mubr.bf16.mxu1 %v2434_v15  ;;  %v2383_v49 = vld [vmem:[%s2516_s22 + $0x28] sm:$0xff]   ;;  %v2424_v53 = vld [vmem:[%s2894_s3 + $0xc0] sm:$0xff]   ;;  %v2391_v59 = vld [vmem:[%s2516_s22 + $0x50] sm:$0xff]  }
  0x1c   : > { %2130 = vmatpush3.bf16.msra.mxu0 %v2389_v20  ;;  %2242 = vmatpush3.bf16.msra.mxu1 %v2392_v21  ;;  %v2421_v50 = vld [vmem:[%s2894_s3 + $0x88] sm:$0xff]   ;;  %v2386_v56 = vld [vmem:[%s2516_s22 + $0x40] sm:$0xff]   ;;  %v2393_v60 = vld [vmem:[%s2516_s22 + $0x58] sm:$0xff]  }
  0x1d   : > { %2131 = vmatprep.subr.bf16.mxu0 %v2394_v23  ;;  %2243 = vmatprep.subr.bf16.mxu1 %v2396_v25  ;;  %v2425_v57 = vld [vmem:[%s2894_s3 + $0x80] sm:$0xff]   ;;  %v2387_v58 = vld [vmem:[%s2516_s22 + $0x48] sm:$0xff]   ;;  %v2403_v63 = vld [vmem:[%s2516_s22 + $0x70] sm:$0xff]  }
  0x1e   : > { %v2397_v61 = vld [vmem:[%s2516_s22 + $0x60] sm:$0xff]   ;;  %v2399_v62 = vld [vmem:[%s2516_s22 + $0x68] sm:$0xff]   ;;  %v2405_v0 = vld [vmem:[%s2516_s22 + $0x78] sm:$0xff]  }
  0x1f   : > { %v271_v7 = vld [vmem:[%s2893_s2] sm:$0xf] }
  0x20   : > { %2132 = vmatpush3.bf16.msra.mxu0 %v2395_v24  ;;  %2244 = vmatpush3.bf16.msra.mxu1 %v2398_v26  ;;  %v2692_v10 = vrot.slane %v271_v7, %v279_v3  ;;  %v2694_v11 = vrot.slane %v271_v7, %v287_v4  ;;  %v2696_v12 = vrot.slane %v271_v7, %v275_v5 }
  0x21   : > { %2133 = vmatprep.subr.bf16.mxu0 %v2400_v28  ;;  %2245 = vmatprep.subr.bf16.mxu1 %v2402_v30  ;;  %v2698_v13 = vrot.slane %v271_v7, %v283_v6 }
  0x22   : > { %1903 = vmatmul.mubr.msk.bf16.gmra.mxu0 %vm423_vm1, %v2379_v22  ;;  %1920 = vmatmul.mubr.msk.bf16.gmra.mxu1 %vm423_vm1, %v2379_v22 }
  0x23   : > { %537 = vmatprep.mubr.bf16.mxu0 %v2434_v15  ;;  %730 = vmatprep.mubr.bf16.mxu1 %v2434_v15 }
  0x24   : > { %2134 = vmatpush3.bf16.msra.mxu0 %v2401_v29  ;;  %2246 = vmatpush3.bf16.msra.mxu1 %v2404_v31 }
  0x25   : > { %2135 = vmatprep.subr.bf16.mxu0 %v2406_v33  ;;  %2247 = vmatprep.subr.bf16.mxu1 %v2408_v35 }
  0x28   : > { %2136 = vmatpush3.bf16.msra.mxu0 %v2407_v34  ;;  %2248 = vmatpush3.bf16.msra.mxu1 %v2409_v36 }
  0x29   : > { %2137 = vmatprep.subr.bf16.mxu0 %v2410_v37  ;;  %2249 = vmatprep.subr.bf16.mxu1 %v2412_v39 }
  0x2a   : > { %1904 = vmatmul.mubr.msk.bf16.gmra.mxu0 %vm423_vm1, %v2380_v27  ;;  %1921 = vmatmul.mubr.msk.bf16.gmra.mxu1 %vm423_vm1, %v2380_v27 }
  0x2b   : > { %547 = vmatprep.mubr.bf16.mxu0 %v2434_v15  ;;  %740 = vmatprep.mubr.bf16.mxu1 %v2434_v15 }
  0x2c   : > { %2138 = vmatpush3.bf16.msra.mxu0 %v2411_v38  ;;  %2250 = vmatpush3.bf16.msra.mxu1 %v2413_v41 }
  0x2d   : > { %2139 = vmatprep.subr.bf16.mxu0 %v2414_v42  ;;  %2251 = vmatprep.subr.bf16.mxu1 %v2416_v44 }
  0x30   : > { %2140 = vmatpush3.bf16.msra.mxu0 %v2415_v43  ;;  %2252 = vmatpush3.bf16.msra.mxu1 %v2417_v45 }
  0x31   : > { %2141 = vmatprep.subr.bf16.mxu0 %v2418_v46  ;;  %2253 = vmatprep.subr.bf16.mxu1 %v2420_v48 }
  0x32   : > { %1905 = vmatmul.mubr.msk.bf16.gmra.mxu0 %vm423_vm1, %v2381_v32  ;;  %1922 = vmatmul.mubr.msk.bf16.gmra.mxu1 %vm423_vm1, %v2381_v32 }
  0x33   : > { %557 = vmatprep.mubr.bf16.mxu0 %v2434_v15  ;;  %750 = vmatprep.mubr.bf16.mxu1 %v2434_v15 }
  0x34   : > { %2142 = vmatpush3.bf16.msra.mxu0 %v2419_v47  ;;  %2254 = vmatpush3.bf16.msra.mxu1 %v2421_v50 }
  0x35   : > { %2143 = vmatprep.subr.bf16.mxu0 %v2422_v51  ;;  %2255 = vmatprep.subr.bf16.mxu1 %v2424_v53 }
  0x38   : > { %2144 = vmatpush3.bf16.msra.mxu0 %v2423_v52  ;;  %2256 = vmatpush3.bf16.msra.mxu1 %v2425_v57 }
  0x3a   : > { %1906 = vmatmul.mubr.msk.bf16.gmra.mxu0 %vm423_vm1, %v2382_v40  ;;  %1923 = vmatmul.mubr.msk.bf16.gmra.mxu1 %vm423_vm1, %v2382_v40 }
  0x3b   : > { %567 = vmatprep.mubr.bf16.mxu0 %v2434_v15  ;;  %760 = vmatprep.mubr.bf16.mxu1 %v2434_v15 }
  0x42   : > { %1907 = vmatmul.mubr.msk.bf16.gmra.mxu0 %vm423_vm1, %v2383_v49  ;;  %1924 = vmatmul.mubr.msk.bf16.gmra.mxu1 %vm423_vm1, %v2383_v49 }
  0x43   : > { %577 = vmatprep.mubr.bf16.mxu0 %v2434_v15  ;;  %770 = vmatprep.mubr.bf16.mxu1 %v2434_v15 }
  0x4a   : > { %1908 = vmatmul.mubr.msk.bf16.gmra.mxu0 %vm423_vm1, %v2384_v54  ;;  %1925 = vmatmul.mubr.msk.bf16.gmra.mxu1 %vm423_vm1, %v2384_v54 }
  0x4b   : > { %587 = vmatprep.mubr.bf16.mxu0 %v2434_v15  ;;  %780 = vmatprep.mubr.bf16.mxu1 %v2434_v15 }
  0x52   : > { %1909 = vmatmul.mubr.msk.bf16.gmra.mxu0 %vm423_vm1, %v2385_v55  ;;  %1926 = vmatmul.mubr.msk.bf16.gmra.mxu1 %vm423_vm1, %v2385_v55 }
  0x53   : > { %597 = vmatprep.mubr.bf16.mxu0 %v2434_v15  ;;  %790 = vmatprep.mubr.bf16.mxu1 %v2434_v15 }
  0x5a   : > { %1910 = vmatmul.mubr.msk.bf16.gmra.mxu0 %vm423_vm1, %v2386_v56  ;;  %1927 = vmatmul.mubr.msk.bf16.gmra.mxu1 %vm423_vm1, %v2386_v56 }
  0x5b   : > { %607 = vmatprep.mubr.bf16.mxu0 %v2434_v15  ;;  %800 = vmatprep.mubr.bf16.mxu1 %v2434_v15 }
  0x62   : > { %1911 = vmatmul.mubr.msk.bf16.gmra.mxu0 %vm423_vm1, %v2387_v58  ;;  %1928 = vmatmul.mubr.msk.bf16.gmra.mxu1 %vm423_vm1, %v2387_v58 }
  0x63   : > { %617 = vmatprep.mubr.bf16.mxu0 %v2434_v15  ;;  %810 = vmatprep.mubr.bf16.mxu1 %v2434_v15 }
  0x6a   : > { %1912 = vmatmul.mubr.msk.bf16.gmra.mxu0 %vm423_vm1, %v2391_v59  ;;  %1929 = vmatmul.mubr.msk.bf16.gmra.mxu1 %vm423_vm1, %v2391_v59 }
  0x6b   : > { %627 = vmatprep.mubr.bf16.mxu0 %v2434_v15  ;;  %820 = vmatprep.mubr.bf16.mxu1 %v2434_v15 }
  0x72   : > { %1913 = vmatmul.mubr.msk.bf16.gmra.mxu0 %vm423_vm1, %v2393_v60  ;;  %1930 = vmatmul.mubr.msk.bf16.gmra.mxu1 %vm423_vm1, %v2393_v60 }
  0x73   : > { %637 = vmatprep.mubr.bf16.mxu0 %v2434_v15  ;;  %830 = vmatprep.mubr.bf16.mxu1 %v2434_v15 }
  0x7a   : > { %1914 = vmatmul.mubr.msk.bf16.gmra.mxu0 %vm423_vm1, %v2397_v61  ;;  %1931 = vmatmul.mubr.msk.bf16.gmra.mxu1 %vm423_vm1, %v2397_v61 }
  0x7b   : > { %647 = vmatprep.mubr.bf16.mxu0 %v2434_v15  ;;  %840 = vmatprep.mubr.bf16.mxu1 %v2434_v15 }
  0x82   : > { %1915 = vmatmul.mubr.msk.bf16.gmra.mxu0 %vm423_vm1, %v2399_v62  ;;  %1932 = vmatmul.mubr.msk.bf16.gmra.mxu1 %vm423_vm1, %v2399_v62 }
  0x83   : > { %657 = vmatprep.mubr.bf16.mxu0 %v2434_v15  ;;  %850 = vmatprep.mubr.bf16.mxu1 %v2434_v15 }
  0x8a   : > { %1916 = vmatmul.mubr.msk.bf16.gmra.mxu0 %vm423_vm1, %v2403_v63  ;;  %1933 = vmatmul.mubr.msk.bf16.gmra.mxu1 %vm423_vm1, %v2403_v63 }
  0x8b   : > { %667 = vmatprep.mubr.bf16.mxu0 %v2434_v15  ;;  %860 = vmatprep.mubr.bf16.mxu1 %v2434_v15 }
  0x92   : > { %1917 = vmatmul.mubr.msk.bf16.gmra.mxu0 %vm423_vm1, %v2405_v0  ;;  %1934 = vmatmul.mubr.msk.bf16.gmra.mxu1 %vm423_vm1, %v2405_v0 }
  0xda   : > { %v519_v8 = vpop.f32.mrf.mxu0  ;;  %v712_v9 = vpop.f32.mrf.mxu1 }
  0xdb   : > { %v520_v22 = vadd.f32 %v519_v8, %v2696_v12  ;;  %v713_v23 = vadd.f32 %v712_v9, %v2698_v13 }
  0xdc   : > { %v521_v14 = vpop.f32.mrf.mxu0  ;;  %v714_v15 = vpop.f32.mrf.mxu1 }
  0xdd   : > { %v522_v18 = vadd.f32 %v521_v14, %v2692_v10  ;;  %v715_v19 = vadd.f32 %v714_v15, %v2694_v11  ;;  %v871_v36 = vmax.f32 %v520_v22, 0.0  ;;  %v873_v37 = vmax.f32 %v713_v23, 0.0 }
  0xde   : > { %v523_v16 = vpop.f32.mrf.mxu0  ;;  %v716_v17 = vpop.f32.mrf.mxu1 }
  0xdf   : > { %v524_v20 = vadd.f32 %v523_v16, %v2696_v12  ;;  %v717_v21 = vadd.f32 %v716_v17, %v2698_v13  ;;  %v872_v32 = vmax.f32 %v522_v18, 0.0  ;;  %v874_v33 = vmax.f32 %v715_v19, 0.0 }
  0xe0   : > { %v525_v24 = vpop.f32.mrf.mxu0  ;;  %v718_v25 = vpop.f32.mrf.mxu1 }
  0xe1   : > { %v526_v26 = vadd.f32 %v525_v24, %v2692_v10  ;;  %v719_v27 = vadd.f32 %v718_v25, %v2694_v11  ;;  %v875_v28 = vmax.f32 %v524_v20, 0.0  ;;  %v877_v29 = vmax.f32 %v717_v21, 0.0 }
  0xe2   : > { %v529_v30 = vpop.f32.mrf.mxu0  ;;  %v722_v31 = vpop.f32.mrf.mxu1 }
  0xe3   : > { %v876_v34 = vmax.f32 %v526_v26, 0.0  ;;  %v878_v35 = vmax.f32 %v719_v27, 0.0  ;;  %v999_v42 = vpack.c.bf16 %v875_v28, %v871_v36  ;;  %v1001_v43 = vpack.c.bf16 %v877_v29, %v873_v37 }
  0xe4   : > { %v531_v38 = vpop.f32.mrf.mxu0  ;;  %v724_v39 = vpop.f32.mrf.mxu1  ;;  %v530_v50 = vadd.f32 %v529_v30, %v2696_v12  ;;  %v723_v51 = vadd.f32 %v722_v31, %v2698_v13 }
  0xe5   : > { %v1000_v40 = vpack.c.bf16 %v876_v34, %v872_v32  ;;  %v1002_v41 = vpack.c.bf16 %v878_v35, %v874_v33  ;;  %v532_v44 = vadd.f32 %v531_v38, %v2692_v10  ;;  %v725_v47 = vadd.f32 %v724_v39, %v2694_v11 }
  0xe6   : > { %v533_v45 = vpop.f32.mrf.mxu0  ;;  %v726_v46 = vpop.f32.mrf.mxu1  ;;  %v879_v0 = vmax.f32 %v530_v50, 0.0  ;;  %v881_v1 = vmax.f32 %v723_v51, 0.0 }
  0xe7   : > { %v534_v48 = vadd.f32 %v533_v45, %v2696_v12  ;;  %v727_v49 = vadd.f32 %v726_v46, %v2698_v13  ;;  %1358 = vmatprep.mubr.bf16.mxu0 %v1000_v40  ;;  %1519 = vmatprep.mubr.bf16.mxu1 %v1002_v41  ;;  %v880_v60 = vmax.f32 %v532_v44, 0.0  ;;  %v882_v61 = vmax.f32 %v725_v47, 0.0 }
  0xe8   : > { %v535_v52 = vpop.f32.mrf.mxu0  ;;  %v728_v53 = vpop.f32.mrf.mxu1  ;;  %1359 = vmatmul.mubr.bf16.vlgmr.msra.gmra.mxu0 %v999_v42  ;;  %1520 = vmatmul.mubr.bf16.vlgmr.msra.gmra.mxu1 %v1001_v43 }
  0xe9   : > { %v536_v54 = vadd.f32 %v535_v52, %v2692_v10  ;;  %v729_v55 = vadd.f32 %v728_v53, %v2694_v11  ;;  %v883_v56 = vmax.f32 %v534_v48, 0.0  ;;  %v885_v57 = vmax.f32 %v727_v49, 0.0 }
  0xea   : > { %v539_v58 = vpop.f32.mrf.mxu0  ;;  %v732_v59 = vpop.f32.mrf.mxu1 }
  0xeb   : > { %v884_v62 = vmax.f32 %v536_v54, 0.0  ;;  %v886_v63 = vmax.f32 %v729_v55, 0.0  ;;  %v1003_v6 = vpack.c.bf16 %v883_v56, %v879_v0  ;;  %v1005_v7 = vpack.c.bf16 %v885_v57, %v881_v1 }
  0xec   : > { %v541_v2 = vpop.f32.mrf.mxu0  ;;  %v734_v3 = vpop.f32.mrf.mxu1  ;;  %v540_v18 = vadd.f32 %v539_v58, %v2696_v12  ;;  %v733_v19 = vadd.f32 %v732_v59, %v2698_v13 }
  0xed   : > { %v1004_v4 = vpack.c.bf16 %v884_v62, %v880_v60  ;;  %v1006_v5 = vpack.c.bf16 %v886_v63, %v882_v61  ;;  %v542_v8 = vadd.f32 %v541_v2, %v2692_v10  ;;  %v735_v15 = vadd.f32 %v734_v3, %v2694_v11 }
  0xee   : > { %v543_v9 = vpop.f32.mrf.mxu0  ;;  %v736_v14 = vpop.f32.mrf.mxu1  ;;  %v887_v32 = vmax.f32 %v540_v18, 0.0  ;;  %v889_v33 = vmax.f32 %v733_v19, 0.0 }
  0xef   : > { %v544_v16 = vadd.f32 %v543_v9, %v2696_v12  ;;  %v737_v17 = vadd.f32 %v736_v14, %v2698_v13  ;;  %1366 = vmatprep.mubr.bf16.mxu0 %v1004_v4  ;;  %1527 = vmatprep.mubr.bf16.mxu1 %v1006_v5  ;;  %v888_v28 = vmax.f32 %v542_v8, 0.0  ;;  %v890_v29 = vmax.f32 %v735_v15, 0.0 }
  0xf0   : > { %v545_v20 = vpop.f32.mrf.mxu0  ;;  %v738_v21 = vpop.f32.mrf.mxu1  ;;  %1367 = vmatmul.mubr.bf16.gmra.mxu0 %v1003_v6  ;;  %1528 = vmatmul.mubr.bf16.gmra.mxu1 %v1005_v7 }
  0xf1   : > { %v546_v22 = vadd.f32 %v545_v20, %v2692_v10  ;;  %v739_v23 = vadd.f32 %v738_v21, %v2694_v11  ;;  %v891_v24 = vmax.f32 %v544_v16, 0.0  ;;  %v893_v25 = vmax.f32 %v737_v17, 0.0 }
  0xf2   : > { %v549_v26 = vpop.f32.mrf.mxu0  ;;  %v742_v27 = vpop.f32.mrf.mxu1 }
  0xf3   : > { %v892_v30 = vmax.f32 %v546_v22, 0.0  ;;  %v894_v31 = vmax.f32 %v739_v23, 0.0  ;;  %v1007_v38 = vpack.c.bf16 %v891_v24, %v887_v32  ;;  %v1009_v39 = vpack.c.bf16 %v893_v25, %v889_v33 }
  0xf4   : > { %v551_v34 = vpop.f32.mrf.mxu0  ;;  %v744_v35 = vpop.f32.mrf.mxu1  ;;  %v550_v46 = vadd.f32 %v549_v26, %v2696_v12  ;;  %v743_v47 = vadd.f32 %v742_v27, %v2698_v13 }
  0xf5   : > { %v1008_v36 = vpack.c.bf16 %v892_v30, %v888_v28  ;;  %v1010_v37 = vpack.c.bf16 %v894_v31, %v890_v29  ;;  %v552_v40 = vadd.f32 %v551_v34, %v2692_v10  ;;  %v745_v43 = vadd.f32 %v744_v35, %v2694_v11 }
  0xf6   : > { %v553_v41 = vpop.f32.mrf.mxu0  ;;  %v746_v42 = vpop.f32.mrf.mxu1  ;;  %v895_v60 = vmax.f32 %v550_v46, 0.0  ;;  %v897_v61 = vmax.f32 %v743_v47, 0.0 }
  0xf7   : > { %v554_v44 = vadd.f32 %v553_v41, %v2696_v12  ;;  %v747_v45 = vadd.f32 %v746_v42, %v2698_v13  ;;  %1374 = vmatprep.mubr.bf16.mxu0 %v1008_v36  ;;  %1535 = vmatprep.mubr.bf16.mxu1 %v1010_v37  ;;  %v896_v56 = vmax.f32 %v552_v40, 0.0  ;;  %v898_v57 = vmax.f32 %v745_v43, 0.0 }
  0xf8   : > { %v555_v48 = vpop.f32.mrf.mxu0  ;;  %v748_v49 = vpop.f32.mrf.mxu1  ;;  %1375 = vmatmul.mubr.bf16.gmra.mxu0 %v1007_v38  ;;  %1536 = vmatmul.mubr.bf16.gmra.mxu1 %v1009_v39 }
  0xf9   : > { %v556_v50 = vadd.f32 %v555_v48, %v2692_v10  ;;  %v749_v51 = vadd.f32 %v748_v49, %v2694_v11  ;;  %v899_v52 = vmax.f32 %v554_v44, 0.0  ;;  %v901_v53 = vmax.f32 %v747_v45, 0.0 }
  0xfa   : > { %v559_v54 = vpop.f32.mrf.mxu0  ;;  %v752_v55 = vpop.f32.mrf.mxu1 }
  0xfb   : > { %v900_v58 = vmax.f32 %v556_v50, 0.0  ;;  %v902_v59 = vmax.f32 %v749_v51, 0.0  ;;  %v1011_v2 = vpack.c.bf16 %v899_v52, %v895_v60  ;;  %v1013_v3 = vpack.c.bf16 %v901_v53, %v897_v61 }
  0xfc   : > { %v561_v62 = vpop.f32.mrf.mxu0  ;;  %v754_v63 = vpop.f32.mrf.mxu1  ;;  %v560_v14 = vadd.f32 %v559_v54, %v2696_v12  ;;  %v753_v15 = vadd.f32 %v752_v55, %v2698_v13 }
  0xfd   : > { %v1012_v0 = vpack.c.bf16 %v900_v58, %v896_v56  ;;  %v1014_v1 = vpack.c.bf16 %v902_v59, %v898_v57  ;;  %v562_v4 = vadd.f32 %v561_v62, %v2692_v10  ;;  %v755_v7 = vadd.f32 %v754_v63, %v2694_v11 }
  0xfe   : > { %v563_v5 = vpop.f32.mrf.mxu0  ;;  %v756_v6 = vpop.f32.mrf.mxu1  ;;  %v903_v28 = vmax.f32 %v560_v14, 0.0  ;;  %v905_v29 = vmax.f32 %v753_v15, 0.0 }
  0xff   : > { %v564_v8 = vadd.f32 %v563_v5, %v2696_v12  ;;  %v757_v9 = vadd.f32 %v756_v6, %v2698_v13  ;;  %1382 = vmatprep.mubr.bf16.mxu0 %v1012_v0  ;;  %1543 = vmatprep.mubr.bf16.mxu1 %v1014_v1  ;;  %v904_v24 = vmax.f32 %v562_v4, 0.0  ;;  %v906_v25 = vmax.f32 %v755_v7, 0.0 }
 0x100   : > { %v565_v16 = vpop.f32.mrf.mxu0  ;;  %v758_v17 = vpop.f32.mrf.mxu1  ;;  %1383 = vmatmul.mubr.bf16.gmra.mxu0 %v1011_v2  ;;  %1544 = vmatmul.mubr.bf16.gmra.mxu1 %v1013_v3 }
 0x101   : > { %v566_v18 = vadd.f32 %v565_v16, %v2692_v10  ;;  %v759_v19 = vadd.f32 %v758_v17, %v2694_v11  ;;  %v907_v20 = vmax.f32 %v564_v8, 0.0  ;;  %v909_v21 = vmax.f32 %v757_v9, 0.0 }
 0x102   : > { %v569_v22 = vpop.f32.mrf.mxu0  ;;  %v762_v23 = vpop.f32.mrf.mxu1 }
 0x103   : > { %v908_v26 = vmax.f32 %v566_v18, 0.0  ;;  %v910_v27 = vmax.f32 %v759_v19, 0.0  ;;  %v1015_v34 = vpack.c.bf16 %v907_v20, %v903_v28  ;;  %v1017_v35 = vpack.c.bf16 %v909_v21, %v905_v29 }
 0x104   : > { %v571_v30 = vpop.f32.mrf.mxu0  ;;  %v764_v31 = vpop.f32.mrf.mxu1  ;;  %v570_v42 = vadd.f32 %v569_v22, %v2696_v12  ;;  %v763_v43 = vadd.f32 %v762_v23, %v2698_v13 }
 0x105   : > { %v1016_v32 = vpack.c.bf16 %v908_v26, %v904_v24  ;;  %v1018_v33 = vpack.c.bf16 %v910_v27, %v906_v25  ;;  %v572_v36 = vadd.f32 %v571_v30, %v2692_v10  ;;  %v765_v39 = vadd.f32 %v764_v31, %v2694_v11 }
 0x106   : > { %v573_v37 = vpop.f32.mrf.mxu0  ;;  %v766_v38 = vpop.f32.mrf.mxu1  ;;  %v911_v56 = vmax.f32 %v570_v42, 0.0  ;;  %v913_v57 = vmax.f32 %v763_v43, 0.0 }
 0x107   : > { %v574_v40 = vadd.f32 %v573_v37, %v2696_v12  ;;  %v767_v41 = vadd.f32 %v766_v38, %v2698_v13  ;;  %1390 = vmatprep.mubr.bf16.mxu0 %v1016_v32  ;;  %1551 = vmatprep.mubr.bf16.mxu1 %v1018_v33  ;;  %v912_v52 = vmax.f32 %v572_v36, 0.0  ;;  %v914_v53 = vmax.f32 %v765_v39, 0.0 }
 0x108   : > { %v575_v44 = vpop.f32.mrf.mxu0  ;;  %v768_v45 = vpop.f32.mrf.mxu1  ;;  %1391 = vmatmul.mubr.bf16.gmra.mxu0 %v1015_v34  ;;  %1552 = vmatmul.mubr.bf16.gmra.mxu1 %v1017_v35 }
 0x109   : > { %v576_v46 = vadd.f32 %v575_v44, %v2692_v10  ;;  %v769_v47 = vadd.f32 %v768_v45, %v2694_v11  ;;  %v915_v48 = vmax.f32 %v574_v40, 0.0  ;;  %v917_v49 = vmax.f32 %v767_v41, 0.0 }
 0x10a   : > { %v579_v50 = vpop.f32.mrf.mxu0  ;;  %v772_v51 = vpop.f32.mrf.mxu1 }
 0x10b   : > { %v916_v54 = vmax.f32 %v576_v46, 0.0  ;;  %v918_v55 = vmax.f32 %v769_v47, 0.0  ;;  %v1019_v62 = vpack.c.bf16 %v915_v48, %v911_v56  ;;  %v1021_v63 = vpack.c.bf16 %v917_v49, %v913_v57 }
 0x10c   : > { %v581_v58 = vpop.f32.mrf.mxu0  ;;  %v774_v59 = vpop.f32.mrf.mxu1  ;;  %v580_v6 = vadd.f32 %v579_v50, %v2696_v12  ;;  %v773_v7 = vadd.f32 %v772_v51, %v2698_v13 }
 0x10d   : > { %v1020_v60 = vpack.c.bf16 %v916_v54, %v912_v52  ;;  %v1022_v61 = vpack.c.bf16 %v918_v55, %v914_v53  ;;  %v582_v0 = vadd.f32 %v581_v58, %v2692_v10  ;;  %v775_v3 = vadd.f32 %v774_v59, %v2694_v11 }
 0x10e   : > { %v583_v1 = vpop.f32.mrf.mxu0  ;;  %v776_v2 = vpop.f32.mrf.mxu1  ;;  %v919_v24 = vmax.f32 %v580_v6, 0.0  ;;  %v921_v25 = vmax.f32 %v773_v7, 0.0 }
 0x10f   : > { %v584_v4 = vadd.f32 %v583_v1, %v2696_v12  ;;  %v777_v5 = vadd.f32 %v776_v2, %v2698_v13  ;;  %1398 = vmatprep.mubr.bf16.mxu0 %v1020_v60  ;;  %1559 = vmatprep.mubr.bf16.mxu1 %v1022_v61  ;;  %v920_v20 = vmax.f32 %v582_v0, 0.0  ;;  %v922_v21 = vmax.f32 %v775_v3, 0.0 }
 0x110   : > { %v585_v8 = vpop.f32.mrf.mxu0  ;;  %v778_v9 = vpop.f32.mrf.mxu1  ;;  %1399 = vmatmul.mubr.bf16.gmra.mxu0 %v1019_v62  ;;  %1560 = vmatmul.mubr.bf16.gmra.mxu1 %v1021_v63 }
 0x111   : > { %v586_v14 = vadd.f32 %v585_v8, %v2692_v10  ;;  %v779_v15 = vadd.f32 %v778_v9, %v2694_v11  ;;  %v923_v16 = vmax.f32 %v584_v4, 0.0  ;;  %v925_v17 = vmax.f32 %v777_v5, 0.0 }
 0x112   : > { %v589_v18 = vpop.f32.mrf.mxu0  ;;  %v782_v19 = vpop.f32.mrf.mxu1 }
 0x113   : > { %v924_v22 = vmax.f32 %v586_v14, 0.0  ;;  %v926_v23 = vmax.f32 %v779_v15, 0.0  ;;  %v1023_v30 = vpack.c.bf16 %v923_v16, %v919_v24  ;;  %v1025_v31 = vpack.c.bf16 %v925_v17, %v921_v25 }
 0x114   : > { %v591_v26 = vpop.f32.mrf.mxu0  ;;  %v784_v27 = vpop.f32.mrf.mxu1  ;;  %v590_v38 = vadd.f32 %v589_v18, %v2696_v12  ;;  %v783_v39 = vadd.f32 %v782_v19, %v2698_v13 }
 0x115   : > { %v1024_v28 = vpack.c.bf16 %v924_v22, %v920_v20  ;;  %v1026_v29 = vpack.c.bf16 %v926_v23, %v922_v21  ;;  %v592_v32 = vadd.f32 %v591_v26, %v2692_v10  ;;  %v785_v35 = vadd.f32 %v784_v27, %v2694_v11 }
 0x116   : > { %v593_v33 = vpop.f32.mrf.mxu0  ;;  %v786_v34 = vpop.f32.mrf.mxu1  ;;  %v927_v52 = vmax.f32 %v590_v38, 0.0  ;;  %v929_v53 = vmax.f32 %v783_v39, 0.0 }
 0x117   : > { %v594_v36 = vadd.f32 %v593_v33, %v2696_v12  ;;  %v787_v37 = vadd.f32 %v786_v34, %v2698_v13  ;;  %1406 = vmatprep.mubr.bf16.mxu0 %v1024_v28  ;;  %1567 = vmatprep.mubr.bf16.mxu1 %v1026_v29  ;;  %v928_v48 = vmax.f32 %v592_v32, 0.0  ;;  %v930_v49 = vmax.f32 %v785_v35, 0.0 }
 0x118   : > { %v595_v40 = vpop.f32.mrf.mxu0  ;;  %v788_v41 = vpop.f32.mrf.mxu1  ;;  %1407 = vmatmul.mubr.bf16.gmra.mxu0 %v1023_v30  ;;  %1568 = vmatmul.mubr.bf16.gmra.mxu1 %v1025_v31 }
 0x119   : > { %v596_v42 = vadd.f32 %v595_v40, %v2692_v10  ;;  %v789_v43 = vadd.f32 %v788_v41, %v2694_v11  ;;  %v931_v44 = vmax.f32 %v594_v36, 0.0  ;;  %v933_v45 = vmax.f32 %v787_v37, 0.0 }
 0x11a   : > { %v599_v46 = vpop.f32.mrf.mxu0  ;;  %v792_v47 = vpop.f32.mrf.mxu1 }
 0x11b   : > { %v932_v50 = vmax.f32 %v596_v42, 0.0  ;;  %v934_v51 = vmax.f32 %v789_v43, 0.0  ;;  %v1027_v58 = vpack.c.bf16 %v931_v44, %v927_v52  ;;  %v1029_v59 = vpack.c.bf16 %v933_v45, %v929_v53 }
 0x11c   : > { %v601_v54 = vpop.f32.mrf.mxu0  ;;  %v794_v55 = vpop.f32.mrf.mxu1  ;;  %v600_v2 = vadd.f32 %v599_v46, %v2696_v12  ;;  %v793_v3 = vadd.f32 %v792_v47, %v2698_v13 }
 0x11d   : > { %v1028_v56 = vpack.c.bf16 %v932_v50, %v928_v48  ;;  %v1030_v57 = vpack.c.bf16 %v934_v51, %v930_v49  ;;  %v602_v60 = vadd.f32 %v601_v54, %v2692_v10  ;;  %v795_v63 = vadd.f32 %v794_v55, %v2694_v11 }
 0x11e   : > { %v603_v61 = vpop.f32.mrf.mxu0  ;;  %v796_v62 = vpop.f32.mrf.mxu1  ;;  %v935_v20 = vmax.f32 %v600_v2, 0.0  ;;  %v937_v21 = vmax.f32 %v793_v3, 0.0 }
 0x11f   : > { %v604_v0 = vadd.f32 %v603_v61, %v2696_v12  ;;  %v797_v1 = vadd.f32 %v796_v62, %v2698_v13  ;;  %1414 = vmatprep.mubr.bf16.mxu0 %v1028_v56  ;;  %1575 = vmatprep.mubr.bf16.mxu1 %v1030_v57  ;;  %v936_v16 = vmax.f32 %v602_v60, 0.0  ;;  %v938_v17 = vmax.f32 %v795_v63, 0.0 }
 0x120   : > { %v605_v4 = vpop.f32.mrf.mxu0  ;;  %v798_v5 = vpop.f32.mrf.mxu1  ;;  %1415 = vmatmul.mubr.bf16.gmra.mxu0 %v1027_v58  ;;  %1576 = vmatmul.mubr.bf16.gmra.mxu1 %v1029_v59 }
 0x121   : > { %v606_v6 = vadd.f32 %v605_v4, %v2692_v10  ;;  %v799_v7 = vadd.f32 %v798_v5, %v2694_v11  ;;  %v939_v8 = vmax.f32 %v604_v0, 0.0  ;;  %v941_v9 = vmax.f32 %v797_v1, 0.0 }
 0x122   : > { %v609_v14 = vpop.f32.mrf.mxu0  ;;  %v802_v15 = vpop.f32.mrf.mxu1 }
 0x123   : > { %v940_v18 = vmax.f32 %v606_v6, 0.0  ;;  %v942_v19 = vmax.f32 %v799_v7, 0.0  ;;  %v1031_v26 = vpack.c.bf16 %v939_v8, %v935_v20  ;;  %v1033_v27 = vpack.c.bf16 %v941_v9, %v937_v21 }
 0x124   : > { %v611_v22 = vpop.f32.mrf.mxu0  ;;  %v804_v23 = vpop.f32.mrf.mxu1  ;;  %v610_v34 = vadd.f32 %v609_v14, %v2696_v12  ;;  %v803_v35 = vadd.f32 %v802_v15, %v2698_v13 }
 0x125   : > { %v1032_v24 = vpack.c.bf16 %v940_v18, %v936_v16  ;;  %v1034_v25 = vpack.c.bf16 %v942_v19, %v938_v17  ;;  %v612_v28 = vadd.f32 %v611_v22, %v2692_v10  ;;  %v805_v31 = vadd.f32 %v804_v23, %v2694_v11 }
 0x126   : > { %v613_v29 = vpop.f32.mrf.mxu0  ;;  %v806_v30 = vpop.f32.mrf.mxu1  ;;  %v943_v48 = vmax.f32 %v610_v34, 0.0  ;;  %v945_v49 = vmax.f32 %v803_v35, 0.0 }
 0x127   : > { %v614_v32 = vadd.f32 %v613_v29, %v2696_v12  ;;  %v807_v33 = vadd.f32 %v806_v30, %v2698_v13  ;;  %1422 = vmatprep.mubr.bf16.mxu0 %v1032_v24  ;;  %1583 = vmatprep.mubr.bf16.mxu1 %v1034_v25  ;;  %v944_v44 = vmax.f32 %v612_v28, 0.0  ;;  %v946_v45 = vmax.f32 %v805_v31, 0.0 }
 0x128   : > { %v615_v36 = vpop.f32.mrf.mxu0  ;;  %v808_v37 = vpop.f32.mrf.mxu1  ;;  %1423 = vmatmul.mubr.bf16.gmra.mxu0 %v1031_v26  ;;  %1584 = vmatmul.mubr.bf16.gmra.mxu1 %v1033_v27 }
 0x129   : > { %v616_v38 = vadd.f32 %v615_v36, %v2692_v10  ;;  %v809_v39 = vadd.f32 %v808_v37, %v2694_v11  ;;  %v947_v40 = vmax.f32 %v614_v32, 0.0  ;;  %v949_v41 = vmax.f32 %v807_v33, 0.0 }
 0x12a   : > { %v619_v42 = vpop.f32.mrf.mxu0  ;;  %v812_v43 = vpop.f32.mrf.mxu1 }
 0x12b   : > { %v948_v46 = vmax.f32 %v616_v38, 0.0  ;;  %v950_v47 = vmax.f32 %v809_v39, 0.0  ;;  %v1035_v54 = vpack.c.bf16 %v947_v40, %v943_v48  ;;  %v1037_v55 = vpack.c.bf16 %v949_v41, %v945_v49 }
 0x12c   : > { %v621_v50 = vpop.f32.mrf.mxu0  ;;  %v814_v51 = vpop.f32.mrf.mxu1  ;;  %v620_v62 = vadd.f32 %v619_v42, %v2696_v12  ;;  %v813_v63 = vadd.f32 %v812_v43, %v2698_v13 }
 0x12d   : > { %v1036_v52 = vpack.c.bf16 %v948_v46, %v944_v44  ;;  %v1038_v53 = vpack.c.bf16 %v950_v47, %v946_v45  ;;  %v622_v56 = vadd.f32 %v621_v50, %v2692_v10  ;;  %v815_v59 = vadd.f32 %v814_v51, %v2694_v11 }
 0x12e   : > { %v623_v57 = vpop.f32.mrf.mxu0  ;;  %v816_v58 = vpop.f32.mrf.mxu1  ;;  %v951_v16 = vmax.f32 %v620_v62, 0.0  ;;  %v953_v17 = vmax.f32 %v813_v63, 0.0 }
 0x12f   : > { %v624_v60 = vadd.f32 %v623_v57, %v2696_v12  ;;  %v817_v61 = vadd.f32 %v816_v58, %v2698_v13  ;;  %1430 = vmatprep.mubr.bf16.mxu0 %v1036_v52  ;;  %1591 = vmatprep.mubr.bf16.mxu1 %v1038_v53  ;;  %v952_v8 = vmax.f32 %v622_v56, 0.0  ;;  %v954_v9 = vmax.f32 %v815_v59, 0.0 }
 0x130   : > { %v625_v0 = vpop.f32.mrf.mxu0  ;;  %v818_v1 = vpop.f32.mrf.mxu1  ;;  %1431 = vmatmul.mubr.bf16.gmra.mxu0 %v1035_v54  ;;  %1592 = vmatmul.mubr.bf16.gmra.mxu1 %v1037_v55 }
 0x131   : > { %v626_v2 = vadd.f32 %v625_v0, %v2692_v10  ;;  %v819_v3 = vadd.f32 %v818_v1, %v2694_v11  ;;  %v955_v4 = vmax.f32 %v624_v60, 0.0  ;;  %v957_v5 = vmax.f32 %v817_v61, 0.0 }
 0x132   : > { %v629_v6 = vpop.f32.mrf.mxu0  ;;  %v822_v7 = vpop.f32.mrf.mxu1 }
 0x133   : > { %v956_v14 = vmax.f32 %v626_v2, 0.0  ;;  %v958_v15 = vmax.f32 %v819_v3, 0.0  ;;  %v1039_v22 = vpack.c.bf16 %v955_v4, %v951_v16  ;;  %v1041_v23 = vpack.c.bf16 %v957_v5, %v953_v17 }
 0x134   : > { %v631_v18 = vpop.f32.mrf.mxu0  ;;  %v824_v19 = vpop.f32.mrf.mxu1  ;;  %v630_v30 = vadd.f32 %v629_v6, %v2696_v12  ;;  %v823_v31 = vadd.f32 %v822_v7, %v2698_v13 }
 0x135   : > { %v1040_v20 = vpack.c.bf16 %v956_v14, %v952_v8  ;;  %v1042_v21 = vpack.c.bf16 %v958_v15, %v954_v9  ;;  %v632_v24 = vadd.f32 %v631_v18, %v2692_v10  ;;  %v825_v27 = vadd.f32 %v824_v19, %v2694_v11 }
 0x136   : > { %v633_v25 = vpop.f32.mrf.mxu0  ;;  %v826_v26 = vpop.f32.mrf.mxu1  ;;  %v959_v44 = vmax.f32 %v630_v30, 0.0  ;;  %v961_v45 = vmax.f32 %v823_v31, 0.0 }
 0x137   : > { %v634_v28 = vadd.f32 %v633_v25, %v2696_v12  ;;  %v827_v29 = vadd.f32 %v826_v26, %v2698_v13  ;;  %1438 = vmatprep.mubr.bf16.mxu0 %v1040_v20  ;;  %1599 = vmatprep.mubr.bf16.mxu1 %v1042_v21  ;;  %v960_v40 = vmax.f32 %v632_v24, 0.0  ;;  %v962_v41 = vmax.f32 %v825_v27, 0.0 }
 0x138   : > { %v635_v32 = vpop.f32.mrf.mxu0  ;;  %v828_v33 = vpop.f32.mrf.mxu1  ;;  %1439 = vmatmul.mubr.bf16.gmra.mxu0 %v1039_v22  ;;  %1600 = vmatmul.mubr.bf16.gmra.mxu1 %v1041_v23 }
 0x139   : > { %v636_v34 = vadd.f32 %v635_v32, %v2692_v10  ;;  %v829_v35 = vadd.f32 %v828_v33, %v2694_v11  ;;  %v963_v36 = vmax.f32 %v634_v28, 0.0  ;;  %v965_v37 = vmax.f32 %v827_v29, 0.0 }
 0x13a   : > { %v639_v38 = vpop.f32.mrf.mxu0  ;;  %v832_v39 = vpop.f32.mrf.mxu1 }
 0x13b   : > { %v964_v42 = vmax.f32 %v636_v34, 0.0  ;;  %v966_v43 = vmax.f32 %v829_v35, 0.0  ;;  %v1043_v50 = vpack.c.bf16 %v963_v36, %v959_v44  ;;  %v1045_v51 = vpack.c.bf16 %v965_v37, %v961_v45 }
 0x13c   : > { %v641_v46 = vpop.f32.mrf.mxu0  ;;  %v834_v47 = vpop.f32.mrf.mxu1  ;;  %v640_v58 = vadd.f32 %v639_v38, %v2696_v12  ;;  %v833_v59 = vadd.f32 %v832_v39, %v2698_v13 }
 0x13d   : > { %v1044_v48 = vpack.c.bf16 %v964_v42, %v960_v40  ;;  %v1046_v49 = vpack.c.bf16 %v966_v43, %v962_v41  ;;  %v642_v52 = vadd.f32 %v641_v46, %v2692_v10  ;;  %v835_v55 = vadd.f32 %v834_v47, %v2694_v11 }
 0x13e   : > { %v643_v53 = vpop.f32.mrf.mxu0  ;;  %v836_v54 = vpop.f32.mrf.mxu1  ;;  %v967_v8 = vmax.f32 %v640_v58, 0.0  ;;  %v969_v9 = vmax.f32 %v833_v59, 0.0 }
 0x13f   : > { %v644_v56 = vadd.f32 %v643_v53, %v2696_v12  ;;  %v837_v57 = vadd.f32 %v836_v54, %v2698_v13  ;;  %1446 = vmatprep.mubr.bf16.mxu0 %v1044_v48  ;;  %1607 = vmatprep.mubr.bf16.mxu1 %v1046_v49  ;;  %v968_v4 = vmax.f32 %v642_v52, 0.0  ;;  %v970_v5 = vmax.f32 %v835_v55, 0.0 }
 0x140   : > { %v645_v60 = vpop.f32.mrf.mxu0  ;;  %v838_v61 = vpop.f32.mrf.mxu1  ;;  %1447 = vmatmul.mubr.bf16.gmra.mxu0 %v1043_v50  ;;  %1608 = vmatmul.mubr.bf16.gmra.mxu1 %v1045_v51 }
 0x141   : > { %v646_v62 = vadd.f32 %v645_v60, %v2692_v10  ;;  %v839_v63 = vadd.f32 %v838_v61, %v2694_v11  ;;  %v971_v0 = vmax.f32 %v644_v56, 0.0  ;;  %v973_v1 = vmax.f32 %v837_v57, 0.0 }
 0x142   : > { %v649_v2 = vpop.f32.mrf.mxu0  ;;  %v842_v3 = vpop.f32.mrf.mxu1 }
 0x143   : > { %v972_v6 = vmax.f32 %v646_v62, 0.0  ;;  %v974_v7 = vmax.f32 %v839_v63, 0.0  ;;  %v1047_v18 = vpack.c.bf16 %v971_v0, %v967_v8  ;;  %v1049_v19 = vpack.c.bf16 %v973_v1, %v969_v9 }
 0x144   : > { %v651_v14 = vpop.f32.mrf.mxu0  ;;  %v844_v15 = vpop.f32.mrf.mxu1  ;;  %v650_v26 = vadd.f32 %v649_v2, %v2696_v12  ;;  %v843_v27 = vadd.f32 %v842_v3, %v2698_v13 }
 0x145   : > { %v1048_v16 = vpack.c.bf16 %v972_v6, %v968_v4  ;;  %v1050_v17 = vpack.c.bf16 %v974_v7, %v970_v5  ;;  %v652_v20 = vadd.f32 %v651_v14, %v2692_v10  ;;  %v845_v23 = vadd.f32 %v844_v15, %v2694_v11 }
 0x146   : > { %v653_v21 = vpop.f32.mrf.mxu0  ;;  %v846_v22 = vpop.f32.mrf.mxu1  ;;  %v975_v40 = vmax.f32 %v650_v26, 0.0  ;;  %v977_v41 = vmax.f32 %v843_v27, 0.0 }
 0x147   : > { %v654_v24 = vadd.f32 %v653_v21, %v2696_v12  ;;  %v847_v25 = vadd.f32 %v846_v22, %v2698_v13  ;;  %1454 = vmatprep.mubr.bf16.mxu0 %v1048_v16  ;;  %1615 = vmatprep.mubr.bf16.mxu1 %v1050_v17  ;;  %v976_v36 = vmax.f32 %v652_v20, 0.0  ;;  %v978_v37 = vmax.f32 %v845_v23, 0.0 }
 0x148   : > { %v655_v28 = vpop.f32.mrf.mxu0  ;;  %v848_v29 = vpop.f32.mrf.mxu1  ;;  %1455 = vmatmul.mubr.bf16.gmra.mxu0 %v1047_v18  ;;  %1616 = vmatmul.mubr.bf16.gmra.mxu1 %v1049_v19 }
 0x149   : > { %v656_v30 = vadd.f32 %v655_v28, %v2692_v10  ;;  %v849_v31 = vadd.f32 %v848_v29, %v2694_v11  ;;  %v979_v32 = vmax.f32 %v654_v24, 0.0  ;;  %v981_v33 = vmax.f32 %v847_v25, 0.0 }
 0x14a   : > { %v659_v34 = vpop.f32.mrf.mxu0  ;;  %v852_v35 = vpop.f32.mrf.mxu1 }
 0x14b   : > { %v980_v38 = vmax.f32 %v656_v30, 0.0  ;;  %v982_v39 = vmax.f32 %v849_v31, 0.0  ;;  %v1051_v46 = vpack.c.bf16 %v979_v32, %v975_v40  ;;  %v1053_v47 = vpack.c.bf16 %v981_v33, %v977_v41  ;;  %v2831_v41 = vld [vmem:[%s2895_s4] ss:$0 sm:$0xff] }
 0x14c   : > { %v661_v42 = vpop.f32.mrf.mxu0  ;;  %v854_v43 = vpop.f32.mrf.mxu1  ;;  %v660_v54 = vadd.f32 %v659_v34, %v2696_v12  ;;  %v853_v55 = vadd.f32 %v852_v35, %v2698_v13 }
 0x14d   : > { %v1052_v44 = vpack.c.bf16 %v980_v38, %v976_v36  ;;  %v1054_v45 = vpack.c.bf16 %v982_v39, %v978_v37  ;;  %v662_v48 = vadd.f32 %v661_v42, %v2692_v10  ;;  %v855_v51 = vadd.f32 %v854_v43, %v2694_v11 }
 0x14e   : > { %v663_v49 = vpop.f32.mrf.mxu0  ;;  %v856_v50 = vpop.f32.mrf.mxu1  ;;  %v983_v4 = vmax.f32 %v660_v54, 0.0  ;;  %v985_v5 = vmax.f32 %v853_v55, 0.0 }
 0x14f   : > { %v664_v52 = vadd.f32 %v663_v49, %v2696_v12  ;;  %v857_v53 = vadd.f32 %v856_v50, %v2698_v13  ;;  %1462 = vmatprep.mubr.bf16.mxu0 %v1052_v44  ;;  %1623 = vmatprep.mubr.bf16.mxu1 %v1054_v45  ;;  %v984_v0 = vmax.f32 %v662_v48, 0.0  ;;  %v986_v1 = vmax.f32 %v855_v51, 0.0 }
 0x150   : > { %v665_v56 = vpop.f32.mrf.mxu0  ;;  %v858_v57 = vpop.f32.mrf.mxu1  ;;  %1463 = vmatmul.mubr.bf16.gmra.mxu0 %v1051_v46  ;;  %1624 = vmatmul.mubr.bf16.gmra.mxu1 %v1053_v47 }
 0x151   : > { %v666_v58 = vadd.f32 %v665_v56, %v2692_v10  ;;  %v859_v59 = vadd.f32 %v858_v57, %v2694_v11  ;;  %v987_v60 = vmax.f32 %v664_v52, 0.0  ;;  %v989_v61 = vmax.f32 %v857_v53, 0.0 }
 0x152   : > { %v669_v62 = vpop.f32.mrf.mxu0  ;;  %v862_v63 = vpop.f32.mrf.mxu1 }
 0x153   : > { %v988_v2 = vmax.f32 %v666_v58, 0.0  ;;  %v990_v3 = vmax.f32 %v859_v59, 0.0  ;;  %v1055_v14 = vpack.c.bf16 %v987_v60, %v983_v4  ;;  %v1057_v15 = vpack.c.bf16 %v989_v61, %v985_v5 }
 0x154   : > { %v671_v6 = vpop.f32.mrf.mxu0  ;;  %v864_v7 = vpop.f32.mrf.mxu1  ;;  %v670_v22 = vadd.f32 %v669_v62, %v2696_v12  ;;  %v863_v23 = vadd.f32 %v862_v63, %v2698_v13 }
 0x155   : > { %v1056_v8 = vpack.c.bf16 %v988_v2, %v984_v0  ;;  %v1058_v9 = vpack.c.bf16 %v990_v3, %v986_v1  ;;  %v672_v16 = vadd.f32 %v671_v6, %v2692_v10  ;;  %v865_v19 = vadd.f32 %v864_v7, %v2694_v11 }
 0x156   : > { %v673_v17 = vpop.f32.mrf.mxu0  ;;  %v866_v18 = vpop.f32.mrf.mxu1  ;;  %v991_v34 = vmax.f32 %v670_v22, 0.0  ;;  %v993_v35 = vmax.f32 %v863_v23, 0.0 }
 0x157   : > { %v674_v20 = vadd.f32 %v673_v17, %v2696_v12  ;;  %v867_v21 = vadd.f32 %v866_v18, %v2698_v13  ;;  %1470 = vmatprep.mubr.bf16.mxu0 %v1056_v8  ;;  %1631 = vmatprep.mubr.bf16.mxu1 %v1058_v9  ;;  %v992_v30 = vmax.f32 %v672_v16, 0.0  ;;  %v994_v31 = vmax.f32 %v865_v19, 0.0 }
 0x158   : > { %v675_v24 = vpop.f32.mrf.mxu0  ;;  %v868_v25 = vpop.f32.mrf.mxu1  ;;  %1471 = vmatmul.mubr.bf16.gmra.mxu0 %v1055_v14  ;;  %1632 = vmatmul.mubr.bf16.gmra.mxu1 %v1057_v15 }
 0x159   : > { %v676_v26 = vadd.f32 %v675_v24, %v2692_v10  ;;  %v869_v27 = vadd.f32 %v868_v25, %v2694_v11  ;;  %v995_v28 = vmax.f32 %v674_v20, 0.0  ;;  %v997_v29 = vmax.f32 %v867_v21, 0.0 }
 0x15b   : > { %v996_v32 = vmax.f32 %v676_v26, 0.0  ;;  %v998_v33 = vmax.f32 %v869_v27, 0.0  ;;  %v1059_v37 = vpack.c.bf16 %v995_v28, %v991_v34  ;;  %v1061_v13 = vpack.c.bf16 %v997_v29, %v993_v35 }
 0x15d   : > { %v1060_v36 = vpack.c.bf16 %v996_v32, %v992_v30  ;;  %v1062_v12 = vpack.c.bf16 %v998_v33, %v994_v31 }
 0x15f   : > { %1478 = vmatprep.mubr.bf16.mxu0 %v1060_v36  ;;  %1639 = vmatprep.mubr.bf16.mxu1 %v1062_v12 }
 0x160   : > { %1479 = vmatmul.mubr.bf16.gmra.mxu0 %v1059_v37  ;;  %1640 = vmatmul.mubr.bf16.gmra.mxu1 %v1061_v13 }
 0x1a8   : > { %v2145_v38 = vpop.f32.mrf.mxu0  ;;  %v2257_v10 = vpop.f32.mrf.mxu1 }
 0x1aa   : > { %v2146_v39 = vpop.f32.mrf.mxu0  ;;  %v2258_v11 = vpop.f32.mrf.mxu1 }
 0x1ab   : > { %v2147_v40 = vadd.f32 %v2146_v39, %v2145_v38  ;;  %v2259_v50 = vadd.f32 %v2258_v11, %v2257_v10 }
 0x1ac   : > { %v2148_v42 = vpop.f32.mrf.mxu0  ;;  %v2260_v43 = vpop.f32.mrf.mxu1 }
 0x1ad   : > { %v1361_v46 = vadd.f32 %v2147_v40, %v2831_v41 }
 0x1ae   : > { %v2149_v44 = vpop.f32.mrf.mxu0  ;;  %v2261_v45 = vpop.f32.mrf.mxu1 }
 0x1af   : > { %v2150_v47 = vadd.f32 %v2149_v44, %v2148_v42  ;;  %v2262_v52 = vadd.f32 %v2261_v45, %v2260_v43  ;;  %v1522_v55 = vadd.f32 %v2259_v50, %v1361_v46 }
 0x1b0   : > { %v2151_v48 = vpop.f32.mrf.mxu0  ;;  %v2263_v49 = vpop.f32.mrf.mxu1 }
 0x1b1   : > { %v1364_v51 = vadd.f32 %v2150_v47, %v2831_v41 }
 0x1b2   : > { %v2152_v53 = vpop.f32.mrf.mxu0  ;;  %v2264_v54 = vpop.f32.mrf.mxu1 }
 0x1b3   : > { %v1525_v56 = vadd.f32 %v2262_v52, %v1364_v51  ;;  %v2153_v57 = vadd.f32 %v2152_v53, %v2151_v48  ;;  %v2265_v3 = vadd.f32 %v2264_v54, %v2263_v49 }
 0x1b4   : > { %v2154_v58 = vpop.f32.mrf.mxu0  ;;  %v2266_v59 = vpop.f32.mrf.mxu1 }
 0x1b5   : > { %v2037_v60 = vpack.c.bf16 %v1525_v56, %v1522_v55  ;;  %v1369_v63 = vadd.f32 %v2153_v57, %v2831_v41 }
 0x1b6   : > { %v2155_v61 = vpop.f32.mrf.mxu0  ;;  %v2267_v62 = vpop.f32.mrf.mxu1 }
 0x1b7   : > { %2038 = vst [vmem:[%s2840_s28] sm:$0xff] %v2037_v60   ;;  %v2156_v0 = vadd.f32 %v2155_v61, %v2154_v58  ;;  %v2268_v5 = vadd.f32 %v2267_v62, %v2266_v59  ;;  %v1530_v8 = vadd.f32 %v2265_v3, %v1369_v63 }
 0x1b8   : > { %v2157_v1 = vpop.f32.mrf.mxu0  ;;  %v2269_v2 = vpop.f32.mrf.mxu1 }
 0x1b9   : > { %v1372_v4 = vadd.f32 %v2156_v0, %v2831_v41 }
 0x1ba   : > { %v2158_v6 = vpop.f32.mrf.mxu0  ;;  %v2270_v7 = vpop.f32.mrf.mxu1 }
 0x1bb   : > { %v1533_v9 = vadd.f32 %v2268_v5, %v1372_v4  ;;  %v2159_v14 = vadd.f32 %v2158_v6, %v2157_v1  ;;  %v2271_v24 = vadd.f32 %v2270_v7, %v2269_v2 }
 0x1bc   : > { %v2160_v15 = vpop.f32.mrf.mxu0  ;;  %v2272_v16 = vpop.f32.mrf.mxu1 }
 0x1bd   : > { %v2042_v17 = vpack.c.bf16 %v1533_v9, %v1530_v8  ;;  %v1377_v20 = vadd.f32 %v2159_v14, %v2831_v41 }
 0x1be   : > { %v2161_v18 = vpop.f32.mrf.mxu0  ;;  %v2273_v19 = vpop.f32.mrf.mxu1 }
 0x1bf   : > { %2114 = vst [vmem:[%s2840_s28 + $0x8] sm:$0xff] %v2042_v17   ;;  %v2162_v21 = vadd.f32 %v2161_v18, %v2160_v15  ;;  %v2274_v26 = vadd.f32 %v2273_v19, %v2272_v16  ;;  %v1538_v29 = vadd.f32 %v2271_v24, %v1377_v20 }
 0x1c0   : > { %v2163_v22 = vpop.f32.mrf.mxu0  ;;  %v2275_v23 = vpop.f32.mrf.mxu1 }
 0x1c1   : > { %v1380_v25 = vadd.f32 %v2162_v21, %v2831_v41 }
 0x1c2   : > { %v2164_v27 = vpop.f32.mrf.mxu0  ;;  %v2276_v28 = vpop.f32.mrf.mxu1 }
 0x1c3   : > { %v1541_v30 = vadd.f32 %v2274_v26, %v1380_v25  ;;  %v2165_v31 = vadd.f32 %v2164_v27, %v2163_v22  ;;  %v2277_v10 = vadd.f32 %v2276_v28, %v2275_v23 }
 0x1c4   : > { %v2166_v32 = vpop.f32.mrf.mxu0  ;;  %v2278_v33 = vpop.f32.mrf.mxu1 }
 0x1c5   : > { %v2047_v34 = vpack.c.bf16 %v1541_v30, %v1538_v29  ;;  %v1385_v12 = vadd.f32 %v2165_v31, %v2831_v41 }
 0x1c6   : > { %v2167_v35 = vpop.f32.mrf.mxu0  ;;  %v2279_v36 = vpop.f32.mrf.mxu1 }
 0x1c7   : > { %2115 = vst [vmem:[%s2840_s28 + $0x10] sm:$0xff] %v2047_v34   ;;  %v2168_v37 = vadd.f32 %v2167_v35, %v2166_v32  ;;  %v2280_v11 = vadd.f32 %v2279_v36, %v2278_v33  ;;  %v1546_v43 = vadd.f32 %v2277_v10, %v1385_v12 }
 0x1c8   : > { %v2169_v13 = vpop.f32.mrf.mxu0  ;;  %v2281_v38 = vpop.f32.mrf.mxu1 }
 0x1c9   : > { %v1388_v39 = vadd.f32 %v2168_v37, %v2831_v41 }
 0x1ca   : > { %v2170_v40 = vpop.f32.mrf.mxu0  ;;  %v2282_v42 = vpop.f32.mrf.mxu1 }
 0x1cb   : > { %v1549_v44 = vadd.f32 %v2280_v11, %v1388_v39  ;;  %v2171_v45 = vadd.f32 %v2170_v40, %v2169_v13  ;;  %v2283_v55 = vadd.f32 %v2282_v42, %v2281_v38 }
 0x1cc   : > { %v2172_v46 = vpop.f32.mrf.mxu0  ;;  %v2284_v47 = vpop.f32.mrf.mxu1 }
 0x1cd   : > { %v2052_v48 = vpack.c.bf16 %v1549_v44, %v1546_v43  ;;  %v1393_v51 = vadd.f32 %v2171_v45, %v2831_v41 }
 0x1ce   : > { %v2173_v49 = vpop.f32.mrf.mxu0  ;;  %v2285_v50 = vpop.f32.mrf.mxu1 }
 0x1cf   : > { %2116 = vst [vmem:[%s2840_s28 + $0x18] sm:$0xff] %v2052_v48   ;;  %v2174_v52 = vadd.f32 %v2173_v49, %v2172_v46  ;;  %v2286_v57 = vadd.f32 %v2285_v50, %v2284_v47  ;;  %v1554_v60 = vadd.f32 %v2283_v55, %v1393_v51 }
 0x1d0   : > { %v2175_v53 = vpop.f32.mrf.mxu0  ;;  %v2287_v54 = vpop.f32.mrf.mxu1 }
 0x1d1   : > { %v1396_v56 = vadd.f32 %v2174_v52, %v2831_v41 }
 0x1d2   : > { %v2176_v58 = vpop.f32.mrf.mxu0  ;;  %v2288_v59 = vpop.f32.mrf.mxu1 }
 0x1d3   : > { %v1557_v61 = vadd.f32 %v2286_v57, %v1396_v56  ;;  %v2177_v62 = vadd.f32 %v2176_v58, %v2175_v53  ;;  %v2289_v8 = vadd.f32 %v2288_v59, %v2287_v54 }
 0x1d4   : > { %v2178_v63 = vpop.f32.mrf.mxu0  ;;  %v2290_v0 = vpop.f32.mrf.mxu1 }
 0x1d5   : > { %v2057_v1 = vpack.c.bf16 %v1557_v61, %v1554_v60  ;;  %v1401_v4 = vadd.f32 %v2177_v62, %v2831_v41 }
 0x1d6   : > { %v2179_v2 = vpop.f32.mrf.mxu0  ;;  %v2291_v3 = vpop.f32.mrf.mxu1 }
 0x1d7   : > { %2117 = vst [vmem:[%s2840_s28 + $0x20] sm:$0xff] %v2057_v1   ;;  %v2180_v5 = vadd.f32 %v2179_v2, %v2178_v63  ;;  %v2292_v14 = vadd.f32 %v2291_v3, %v2290_v0  ;;  %v1562_v17 = vadd.f32 %v2289_v8, %v1401_v4 }
 0x1d8   : > { %v2181_v6 = vpop.f32.mrf.mxu0  ;;  %v2293_v7 = vpop.f32.mrf.mxu1 }
 0x1d9   : > { %v1404_v9 = vadd.f32 %v2180_v5, %v2831_v41 }
 0x1da   : > { %v2182_v15 = vpop.f32.mrf.mxu0  ;;  %v2294_v16 = vpop.f32.mrf.mxu1 }
 0x1db   : > { %v1565_v18 = vadd.f32 %v2292_v14, %v1404_v9  ;;  %v2183_v19 = vadd.f32 %v2182_v15, %v2181_v6  ;;  %v2295_v29 = vadd.f32 %v2294_v16, %v2293_v7 }
 0x1dc   : > { %v2184_v20 = vpop.f32.mrf.mxu0  ;;  %v2296_v21 = vpop.f32.mrf.mxu1 }
 0x1dd   : > { %v2062_v22 = vpack.c.bf16 %v1565_v18, %v1562_v17  ;;  %v1409_v25 = vadd.f32 %v2183_v19, %v2831_v41 }
 0x1de   : > { %v2185_v23 = vpop.f32.mrf.mxu0  ;;  %v2297_v24 = vpop.f32.mrf.mxu1 }
 0x1df   : > { %2118 = vst [vmem:[%s2840_s28 + $0x28] sm:$0xff] %v2062_v22   ;;  %v2186_v26 = vadd.f32 %v2185_v23, %v2184_v20  ;;  %v2298_v31 = vadd.f32 %v2297_v24, %v2296_v21  ;;  %v1570_v34 = vadd.f32 %v2295_v29, %v1409_v25 }
 0x1e0   : > { %v2187_v27 = vpop.f32.mrf.mxu0  ;;  %v2299_v28 = vpop.f32.mrf.mxu1 }
 0x1e1   : > { %v1412_v30 = vadd.f32 %v2186_v26, %v2831_v41 }
 0x1e2   : > { %v2188_v32 = vpop.f32.mrf.mxu0  ;;  %v2300_v33 = vpop.f32.mrf.mxu1 }
 0x1e3   : > { %v1573_v35 = vadd.f32 %v2298_v31, %v1412_v30  ;;  %v2189_v36 = vadd.f32 %v2188_v32, %v2187_v27  ;;  %v2301_v43 = vadd.f32 %v2300_v33, %v2299_v28 }
 0x1e4   : > { %v2190_v12 = vpop.f32.mrf.mxu0  ;;  %v2302_v37 = vpop.f32.mrf.mxu1 }
 0x1e5   : > { %v2067_v13 = vpack.c.bf16 %v1573_v35, %v1570_v34  ;;  %v1417_v39 = vadd.f32 %v2189_v36, %v2831_v41 }
 0x1e6   : > { %v2191_v38 = vpop.f32.mrf.mxu0  ;;  %v2303_v10 = vpop.f32.mrf.mxu1 }
 0x1e7   : > { %2119 = vst [vmem:[%s2840_s28 + $0x30] sm:$0xff] %v2067_v13   ;;  %v2192_v11 = vadd.f32 %v2191_v38, %v2190_v12  ;;  %v2304_v45 = vadd.f32 %v2303_v10, %v2302_v37  ;;  %v1578_v48 = vadd.f32 %v2301_v43, %v1417_v39 }
 0x1e8   : > { %v2193_v40 = vpop.f32.mrf.mxu0  ;;  %v2305_v42 = vpop.f32.mrf.mxu1 }
 0x1e9   : > { %v1420_v44 = vadd.f32 %v2192_v11, %v2831_v41 }
 0x1ea   : > { %v2194_v46 = vpop.f32.mrf.mxu0  ;;  %v2306_v47 = vpop.f32.mrf.mxu1 }
 0x1eb   : > { %v1581_v49 = vadd.f32 %v2304_v45, %v1420_v44  ;;  %v2195_v50 = vadd.f32 %v2194_v46, %v2193_v40  ;;  %v2307_v60 = vadd.f32 %v2306_v47, %v2305_v42 }
 0x1ec   : > { %v2196_v51 = vpop.f32.mrf.mxu0  ;;  %v2308_v52 = vpop.f32.mrf.mxu1 }
 0x1ed   : > { %v2072_v53 = vpack.c.bf16 %v1581_v49, %v1578_v48  ;;  %v1425_v56 = vadd.f32 %v2195_v50, %v2831_v41 }
 0x1ee   : > { %v2197_v54 = vpop.f32.mrf.mxu0  ;;  %v2309_v55 = vpop.f32.mrf.mxu1 }
 0x1ef   : > { %2120 = vst [vmem:[%s2840_s28 + $0x38] sm:$0xff] %v2072_v53   ;;  %v2198_v57 = vadd.f32 %v2197_v54, %v2196_v51  ;;  %v2310_v62 = vadd.f32 %v2309_v55, %v2308_v52  ;;  %v1586_v1 = vadd.f32 %v2307_v60, %v1425_v56 }
 0x1f0   : > { %v2199_v58 = vpop.f32.mrf.mxu0  ;;  %v2311_v59 = vpop.f32.mrf.mxu1 }
 0x1f1   : > { %v1428_v61 = vadd.f32 %v2198_v57, %v2831_v41 }
 0x1f2   : > { %v2200_v63 = vpop.f32.mrf.mxu0  ;;  %v2312_v0 = vpop.f32.mrf.mxu1 }
 0x1f3   : > { %v1589_v2 = vadd.f32 %v2310_v62, %v1428_v61  ;;  %v2201_v3 = vadd.f32 %v2200_v63, %v2199_v58  ;;  %v2313_v17 = vadd.f32 %v2312_v0, %v2311_v59 }
 0x1f4   : > { %v2202_v4 = vpop.f32.mrf.mxu0  ;;  %v2314_v5 = vpop.f32.mrf.mxu1 }
 0x1f5   : > { %v2077_v6 = vpack.c.bf16 %v1589_v2, %v1586_v1  ;;  %v1433_v9 = vadd.f32 %v2201_v3, %v2831_v41 }
 0x1f6   : > { %v2203_v7 = vpop.f32.mrf.mxu0  ;;  %v2315_v8 = vpop.f32.mrf.mxu1 }
 0x1f7   : > { %2121 = vst [vmem:[%s2840_s28 + $0x40] sm:$0xff] %v2077_v6   ;;  %v2204_v14 = vadd.f32 %v2203_v7, %v2202_v4  ;;  %v2316_v19 = vadd.f32 %v2315_v8, %v2314_v5  ;;  %v1594_v22 = vadd.f32 %v2313_v17, %v1433_v9 }
 0x1f8   : > { %v2205_v15 = vpop.f32.mrf.mxu0  ;;  %v2317_v16 = vpop.f32.mrf.mxu1 }
 0x1f9   : > { %v1436_v18 = vadd.f32 %v2204_v14, %v2831_v41 }
 0x1fa   : > { %v2206_v20 = vpop.f32.mrf.mxu0  ;;  %v2318_v21 = vpop.f32.mrf.mxu1 }
 0x1fb   : > { %v1597_v23 = vadd.f32 %v2316_v19, %v1436_v18  ;;  %v2207_v24 = vadd.f32 %v2206_v20, %v2205_v15  ;;  %v2319_v34 = vadd.f32 %v2318_v21, %v2317_v16 }
 0x1fc   : > { %v2208_v25 = vpop.f32.mrf.mxu0  ;;  %v2320_v26 = vpop.f32.mrf.mxu1 }
 0x1fd   : > { %v2082_v27 = vpack.c.bf16 %v1597_v23, %v1594_v22  ;;  %v1441_v30 = vadd.f32 %v2207_v24, %v2831_v41 }
 0x1fe   : > { %v2209_v28 = vpop.f32.mrf.mxu0  ;;  %v2321_v29 = vpop.f32.mrf.mxu1 }
 0x1ff   : > { %2122 = vst [vmem:[%s2840_s28 + $0x48] sm:$0xff] %v2082_v27   ;;  %v2210_v31 = vadd.f32 %v2209_v28, %v2208_v25  ;;  %v2322_v36 = vadd.f32 %v2321_v29, %v2320_v26  ;;  %v1602_v13 = vadd.f32 %v2319_v34, %v1441_v30 }
 0x200   : > { %v2211_v32 = vpop.f32.mrf.mxu0  ;;  %v2323_v33 = vpop.f32.mrf.mxu1 }
 0x201   : > { %v1444_v35 = vadd.f32 %v2210_v31, %v2831_v41 }
 0x202   : > { %v2212_v12 = vpop.f32.mrf.mxu0  ;;  %v2324_v37 = vpop.f32.mrf.mxu1 }
 0x203   : > { %v1605_v38 = vadd.f32 %v2322_v36, %v1444_v35  ;;  %v2213_v10 = vadd.f32 %v2212_v12, %v2211_v32  ;;  %v2325_v48 = vadd.f32 %v2324_v37, %v2323_v33 }
 0x204   : > { %v2214_v39 = vpop.f32.mrf.mxu0  ;;  %v2326_v11 = vpop.f32.mrf.mxu1 }
 0x205   : > { %v2087_v40 = vpack.c.bf16 %v1605_v38, %v1602_v13  ;;  %v1449_v44 = vadd.f32 %v2213_v10, %v2831_v41 }
 0x206   : > { %v2215_v42 = vpop.f32.mrf.mxu0  ;;  %v2327_v43 = vpop.f32.mrf.mxu1 }
 0x207   : > { %2123 = vst [vmem:[%s2840_s28 + $0x50] sm:$0xff] %v2087_v40   ;;  %v2216_v45 = vadd.f32 %v2215_v42, %v2214_v39  ;;  %v2328_v50 = vadd.f32 %v2327_v43, %v2326_v11  ;;  %v1610_v53 = vadd.f32 %v2325_v48, %v1449_v44 }
 0x208   : > { %v2217_v46 = vpop.f32.mrf.mxu0  ;;  %v2329_v47 = vpop.f32.mrf.mxu1 }
 0x209   : > { %v1452_v49 = vadd.f32 %v2216_v45, %v2831_v41 }
 0x20a   : > { %v2218_v51 = vpop.f32.mrf.mxu0  ;;  %v2330_v52 = vpop.f32.mrf.mxu1 }
 0x20b   : > { %v1613_v54 = vadd.f32 %v2328_v50, %v1452_v49  ;;  %v2219_v55 = vadd.f32 %v2218_v51, %v2217_v46  ;;  %v2331_v1 = vadd.f32 %v2330_v52, %v2329_v47 }
 0x20c   : > { %v2220_v56 = vpop.f32.mrf.mxu0  ;;  %v2332_v57 = vpop.f32.mrf.mxu1 }
 0x20d   : > { %v2092_v58 = vpack.c.bf16 %v1613_v54, %v1610_v53  ;;  %v1457_v61 = vadd.f32 %v2219_v55, %v2831_v41 }
 0x20e   : > { %v2221_v59 = vpop.f32.mrf.mxu0  ;;  %v2333_v60 = vpop.f32.mrf.mxu1 }
 0x20f   : > { %2124 = vst [vmem:[%s2840_s28 + $0x58] sm:$0xff] %v2092_v58   ;;  %v2222_v62 = vadd.f32 %v2221_v59, %v2220_v56  ;;  %v2334_v3 = vadd.f32 %v2333_v60, %v2332_v57  ;;  %v1618_v6 = vadd.f32 %v2331_v1, %v1457_v61 }
 0x210   : > { %v2223_v63 = vpop.f32.mrf.mxu0  ;;  %v2335_v0 = vpop.f32.mrf.mxu1 }
 0x211   : > { %v1460_v2 = vadd.f32 %v2222_v62, %v2831_v41 }
 0x212   : > { %v2224_v4 = vpop.f32.mrf.mxu0  ;;  %v2336_v5 = vpop.f32.mrf.mxu1 }
 0x213   : > { %v1621_v7 = vadd.f32 %v2334_v3, %v1460_v2  ;;  %v2225_v8 = vadd.f32 %v2224_v4, %v2223_v63  ;;  %v2337_v22 = vadd.f32 %v2336_v5, %v2335_v0 }
 0x214   : > { %v2226_v9 = vpop.f32.mrf.mxu0  ;;  %v2338_v14 = vpop.f32.mrf.mxu1 }
 0x215   : > { %v2097_v15 = vpack.c.bf16 %v1621_v7, %v1618_v6  ;;  %v1465_v18 = vadd.f32 %v2225_v8, %v2831_v41 }
 0x216   : > { %v2227_v16 = vpop.f32.mrf.mxu0  ;;  %v2339_v17 = vpop.f32.mrf.mxu1 }
 0x217   : > { %2125 = vst [vmem:[%s2840_s28 + $0x60] sm:$0xff] %v2097_v15   ;;  %v2228_v19 = vadd.f32 %v2227_v16, %v2226_v9  ;;  %v2340_v24 = vadd.f32 %v2339_v17, %v2338_v14  ;;  %v1626_v27 = vadd.f32 %v2337_v22, %v1465_v18 }
 0x218   : > { %v2229_v20 = vpop.f32.mrf.mxu0  ;;  %v2341_v21 = vpop.f32.mrf.mxu1 }
 0x219   : > { %v1468_v23 = vadd.f32 %v2228_v19, %v2831_v41 }
 0x21a   : > { %v2230_v25 = vpop.f32.mrf.mxu0  ;;  %v2342_v26 = vpop.f32.mrf.mxu1 }
 0x21b   : > { %v1629_v28 = vadd.f32 %v2340_v24, %v1468_v23  ;;  %v2231_v29 = vadd.f32 %v2230_v25, %v2229_v20  ;;  %v2343_v13 = vadd.f32 %v2342_v26, %v2341_v21 }
 0x21c   : > { %v2232_v30 = vpop.f32.mrf.mxu0  ;;  %v2344_v31 = vpop.f32.mrf.mxu1 }
 0x21d   : > { %v2102_v32 = vpack.c.bf16 %v1629_v28, %v1626_v27  ;;  %v1473_v35 = vadd.f32 %v2231_v29, %v2831_v41 }
 0x21e   : > { %v2233_v33 = vpop.f32.mrf.mxu0  ;;  %v2345_v34 = vpop.f32.mrf.mxu1 }
 0x21f   : > { %2126 = vst [vmem:[%s2840_s28 + $0x68] sm:$0xff] %v2102_v32   ;;  %v2234_v36 = vadd.f32 %v2233_v33, %v2232_v30  ;;  %v2346_v10 = vadd.f32 %v2345_v34, %v2344_v31  ;;  %v1634_v40 = vadd.f32 %v2343_v13, %v1473_v35 }
 0x220   : > { %v2235_v12 = vpop.f32.mrf.mxu0  ;;  %v2347_v37 = vpop.f32.mrf.mxu1 }
 0x221   : > { %v1476_v38 = vadd.f32 %v2234_v36, %v2831_v41 }
 0x222   : > { %v2236_v39 = vpop.f32.mrf.mxu0  ;;  %v2348_v11 = vpop.f32.mrf.mxu1 }
 0x223   : > { %v1637_v42 = vadd.f32 %v2346_v10, %v1476_v38  ;;  %v2237_v43 = vadd.f32 %v2236_v39, %v2235_v12  ;;  %v2349_v51 = vadd.f32 %v2348_v11, %v2347_v37 }
 0x224   : > { %v2238_v44 = vpop.f32.mrf.mxu0  ;;  %v2350_v45 = vpop.f32.mrf.mxu1 }
 0x225   : > { %v2107_v46 = vpack.c.bf16 %v1637_v42, %v1634_v40  ;;  %v1481_v49 = vadd.f32 %v2237_v43, %v2831_v41 }
 0x226   : > { %v2239_v47 = vpop.f32.mrf.mxu0  ;;  %v2351_v48 = vpop.f32.mrf.mxu1 }
 0x227   : > { %2127 = vst [vmem:[%s2840_s28 + $0x70] sm:$0xff] %v2107_v46   ;;  %v2240_v50 = vadd.f32 %v2239_v47, %v2238_v44  ;;  %v2352_v53 = vadd.f32 %v2351_v48, %v2350_v45  ;;  %v1642_v54 = vadd.f32 %v2349_v51, %v1481_v49 }
 0x229   : > { %v1484_v52 = vadd.f32 %v2240_v50, %v2831_v41 }
 0x22b   : > { %v1645_v55 = vadd.f32 %v2352_v53, %v1484_v52 }
 0x22d   : > { %v2112_v56 = vpack.c.bf16 %v1645_v55, %v1642_v54 }
 0x22f   : > { %2128 = vst [vmem:[%s2840_s28 + $0x78] sm:$0xff] %v2112_v56  }
 0x230 PF: > { %s15_s18 = sadd.s32 1, %s2432_s18  }
 0x231   : > { %p12_p4 = scmp.ge.s32.totalorder %s15_s18, 4  }
 0x233   :  { %14 = sbr.rel (!%p12_p4) target bundleno = 1 (0x1), region = 70 }

</bundles_post_ra>
